<compile_context>
chip_gen: v6e
topology: v6e:2x2x1
jax: 0.10.0
libtpu: 0.0.40
codegen_flags: <defaults>
</compile_context>

<pallas_src>
import math

import jax
import jax.numpy as jnp
from jax import lax
from jax.experimental import pallas as pl
from jax.experimental.pallas import tpu as pltpu

# ------------------------- small synthetic BERT config -------------------------
VOCAB = 100
TYPE_VOCAB = 2
MAX_POS = 32
HIDDEN = 32          # args.bert_hidden_size
N_LAYERS = 2         # config.num_hidden_layers
N_HEADS = 2
HEAD_DIM = HIDDEN // N_HEADS
INTERMEDIATE = 64
ADAPTER = 16         # bottleneck of the Houlsby adapters
LN_EPS = 1e-12
BATCH = 2
SEQ = 8
TASKCLA = [(0, 3), (1, 5)]           # 'til' scenario -> one linear head per task
TOTAL_CLASSES = sum(n for _, n in TASKCLA)
SCENARIO = "til"

DTYPE = jnp.float32


# ------------------------------ in-kernel helpers ------------------------------
def _gelu(x):
    # tanh-approximation GELU (routes the transcendental to the EUP slot).
    # TODO(synk): HF BERT uses the exact erf GELU; tanh approx differs by ~3e-4 max.
    c = 0.7978845608028654  # sqrt(2/pi)
    return 0.5 * x * (1.0 + jnp.tanh(c * (x + 0.044715 * x * x * x)))


def _layernorm(h, g, b):
    mu = jnp.mean(h, axis=-1, keepdims=True)
    var = jnp.mean(jnp.square(h - mu), axis=-1, keepdims=True)
    return (h - mu) * lax.rsqrt(var + LN_EPS) * g + b


# --------------------------- single fused forward kernel ------------------------
def _fused_forward_kernel(
    emb_ref, bias_ref, eg_ref, ebias_ref,
    qkv_w_ref, qkv_b_ref, ao_w_ref, ao_b_ref,
    aad_dw_ref, aad_db_ref, aad_uw_ref, aad_ub_ref,
    aln_g_ref, aln_b_ref,
    i_w_ref, i_b_ref, ow_ref, ob_ref,
    oad_dw_ref, oad_db_ref, oad_uw_ref, oad_ub_ref,
    oln_g_ref, oln_b_ref,
    pool_w_ref, pool_b_ref, head_w_ref, head_b_ref,
    logits_ref, norm_ref,
    ctx_acc,
):
    scale = 1.0 / math.sqrt(HEAD_DIM)

    # ---- embedding LayerNorm (dropout layers are identity: eval mode) ----
    h = _layernorm(emb_ref[...].astype(jnp.float32), eg_ref[...], ebias_ref[...])
    bias = bias_ref[...]                                     # (B, S) additive mask

    # ---- encoder layers: weights stacked on a leading (L,) axis, static unroll ----
    for l in range(N_LAYERS):
        # fused QKV projection: one (HIDDEN, 3*HIDDEN) matmul instead of three
        qkv = jnp.dot(h, qkv_w_ref[l], preferred_element_type=jnp.float32) + qkv_b_ref[l]

        # attention with head split/merge done in-kernel on the HIDDEN axis
        for b in range(BATCH):
            r0 = b * SEQ
            bias_b = bias[b:b + 1, :]                        # (1, S) -> broadcast (S, S)
            for hh in range(N_HEADS):
                c0 = hh * HEAD_DIM
                q = qkv[r0:r0 + SEQ, c0:c0 + HEAD_DIM]
                k = qkv[r0:r0 + SEQ, HIDDEN + c0:HIDDEN + c0 + HEAD_DIM]
                v = qkv[r0:r0 + SEQ, 2 * HIDDEN + c0:2 * HIDDEN + c0 + HEAD_DIM]
                s = jnp.einsum("qd,kd->qk", q, k,
                               preferred_element_type=jnp.float32) * scale + bias_b
                s = s - jnp.max(s, axis=-1, keepdims=True)
                p = jnp.exp(s)
                p = p * pl.reciprocal(jnp.sum(p, axis=-1, keepdims=True), approx=True)
                ctx_acc[r0:r0 + SEQ, c0:c0 + HEAD_DIM] = jnp.dot(
                    p, v, preferred_element_type=jnp.float32)
        ctx = ctx_acc[...]                                   # (B*S, HIDDEN), heads merged

        # BertSelfOutput: dense -> adapter (x + W_up(gelu(W_down x))) -> LN(x + input)
        a = jnp.dot(ctx, ao_w_ref[l], preferred_element_type=jnp.float32) + ao_b_ref[l]
        ad = _gelu(jnp.dot(a, aad_dw_ref[l], preferred_element_type=jnp.float32)
                   + aad_db_ref[l])
        a = a + jnp.dot(ad, aad_uw_ref[l], preferred_element_type=jnp.float32) + aad_ub_ref[l]
        attn_out = _layernorm(a + h, aln_g_ref[l], aln_b_ref[l])

        # BertIntermediate (gelu) + BertOutput with adapter
        inter = _gelu(jnp.dot(attn_out, i_w_ref[l], preferred_element_type=jnp.float32)
                      + i_b_ref[l])
        o = jnp.dot(inter, ow_ref[l], preferred_element_type=jnp.float32) + ob_ref[l]
        od = _gelu(jnp.dot(o, oad_dw_ref[l], preferred_element_type=jnp.float32)
                   + oad_db_ref[l])
        o = o + jnp.dot(od, oad_uw_ref[l], preferred_element_type=jnp.float32) + oad_ub_ref[l]
        h = _layernorm(o + attn_out, oln_g_ref[l], oln_b_ref[l])

    # ---- pooler ([CLS] token), task heads (concatenated), F.normalize ----
    # TODO(synk): train-mode dropout on pooled_output (args.hidden_dropout_prob) not implemented.
    for b in range(BATCH):
        cls_b = h[b * SEQ:b * SEQ + 1, :]                    # (1, HIDDEN)
        pooled = jnp.tanh(jnp.dot(cls_b, pool_w_ref[...],
                                  preferred_element_type=jnp.float32) + pool_b_ref[...])
        logits = jnp.dot(pooled, head_w_ref[...],
                         preferred_element_type=jnp.float32) + head_b_ref[...]
        logits_ref[b:b + 1, :] = logits.astype(logits_ref.dtype)
        nrm = jnp.sqrt(jnp.sum(pooled * pooled, axis=-1, keepdims=True))
        norm_ref[b:b + 1, :] = (pooled / jnp.maximum(nrm, 1e-12)).astype(norm_ref.dtype)


def fused_forward(packed, emb_flat, attn_bias):
    out_shape = (
        jax.ShapeDtypeStruct((BATCH, TOTAL_CLASSES), DTYPE),
        jax.ShapeDtypeStruct((BATCH, HIDDEN), DTYPE),
    )
    return pl.pallas_call(
        _fused_forward_kernel,
        out_shape=out_shape,
        scratch_shapes=[pltpu.VMEM((BATCH * SEQ, HIDDEN), jnp.float32)],
    )(
        emb_flat, attn_bias,
        packed["emb_ln_g"], packed["emb_ln_b"],
        packed["qkv_w"], packed["qkv_b"],
        packed["ao_w"], packed["ao_b"],
        packed["a_ad_dw"], packed["a_ad_db"], packed["a_ad_uw"], packed["a_ad_ub"],
        packed["a_ln_g"], packed["a_ln_b"],
        packed["i_w"], packed["i_b"], packed["o_w"], packed["o_b"],
        packed["o_ad_dw"], packed["o_ad_db"], packed["o_ad_uw"], packed["o_ad_ub"],
        packed["o_ln_g"], packed["o_ln_b"],
        packed["pool_w"], packed["pool_b"],
        packed["head_w"], packed["head_b"],
    )


# ------------------------------ parameter init ----------------------------------
def _dense_init(key, fan_in, fan_out):
    w = jax.random.normal(key, (fan_in, fan_out), DTYPE) * 0.02
    b = jnp.zeros((fan_out,), DTYPE)
    return w, b


def init_params(key):
    keys = iter(jax.random.split(key, 256))
    p = {}
    p["word_emb"] = jax.random.normal(next(keys), (VOCAB, HIDDEN), DTYPE) * 0.02
    p["pos_emb"] = jax.random.normal(next(keys), (MAX_POS, HIDDEN), DTYPE) * 0.02
    p["type_emb"] = jax.random.normal(next(keys), (TYPE_VOCAB, HIDDEN), DTYPE) * 0.02
    p["emb_ln_g"] = jnp.ones((HIDDEN,), DTYPE)
    p["emb_ln_b"] = jnp.zeros((HIDDEN,), DTYPE)

    layers = []
    for _ in range(N_LAYERS):
        lp = {}
        lp["q_w"], lp["q_b"] = _dense_init(next(keys), HIDDEN, HIDDEN)
        lp["k_w"], lp["k_b"] = _dense_init(next(keys), HIDDEN, HIDDEN)
        lp["v_w"], lp["v_b"] = _dense_init(next(keys), HIDDEN, HIDDEN)
        lp["ao_w"], lp["ao_b"] = _dense_init(next(keys), HIDDEN, HIDDEN)
        lp["a_ad_dw"], lp["a_ad_db"] = _dense_init(next(keys), HIDDEN, ADAPTER)
        lp["a_ad_uw"], lp["a_ad_ub"] = _dense_init(next(keys), ADAPTER, HIDDEN)
        lp["a_ln_g"] = jnp.ones((HIDDEN,), DTYPE)
        lp["a_ln_b"] = jnp.zeros((HIDDEN,), DTYPE)
        lp["i_w"], lp["i_b"] = _dense_init(next(keys), HIDDEN, INTERMEDIATE)
        lp["o_w"], lp["o_b"] = _dense_init(next(keys), INTERMEDIATE, HIDDEN)
        lp["o_ad_dw"], lp["o_ad_db"] = _dense_init(next(keys), HIDDEN, ADAPTER)
        lp["o_ad_uw"], lp["o_ad_ub"] = _dense_init(next(keys), ADAPTER, HIDDEN)
        lp["o_ln_g"] = jnp.ones((HIDDEN,), DTYPE)
        lp["o_ln_b"] = jnp.zeros((HIDDEN,), DTYPE)
        layers.append(lp)
    p["layers"] = layers

    p["pool_w"], p["pool_b"] = _dense_init(next(keys), HIDDEN, HIDDEN)
    p["heads"] = [_dense_init(next(keys), HIDDEN, n) for _, n in TASKCLA]
    return p


def pack_params(p):
    """Stack per-layer weights on a leading (L,) axis, concat QKV and the task heads."""
    L = p["layers"]

    def stack_w(key):
        return jnp.stack([lp[key] for lp in L], axis=0)

    def stack_b(key):
        return jnp.stack([lp[key].reshape(1, -1) for lp in L], axis=0)

    packed = {
        "word_emb": p["word_emb"], "pos_emb": p["pos_emb"], "type_emb": p["type_emb"],
        "emb_ln_g": p["emb_ln_g"].reshape(1, HIDDEN),
        "emb_ln_b": p["emb_ln_b"].reshape(1, HIDDEN),
        "qkv_w": jnp.stack(
            [jnp.concatenate([lp["q_w"], lp["k_w"], lp["v_w"]], axis=1) for lp in L], 0),
        "qkv_b": jnp.stack(
            [jnp.concatenate([lp["q_b"], lp["k_b"], lp["v_b"]], axis=0).reshape(1, 3 * HIDDEN)
             for lp in L], 0),
        "ao_w": stack_w("ao_w"), "ao_b": stack_b("ao_b"),
        "a_ad_dw": stack_w("a_ad_dw"), "a_ad_db": stack_b("a_ad_db"),
        "a_ad_uw": stack_w("a_ad_uw"), "a_ad_ub": stack_b("a_ad_ub"),
        "a_ln_g": stack_b("a_ln_g"), "a_ln_b": stack_b("a_ln_b"),
        "i_w": stack_w("i_w"), "i_b": stack_b("i_b"),
        "o_w": stack_w("o_w"), "o_b": stack_b("o_b"),
        "o_ad_dw": stack_w("o_ad_dw"), "o_ad_db": stack_b("o_ad_db"),
        "o_ad_uw": stack_w("o_ad_uw"), "o_ad_ub": stack_b("o_ad_ub"),
        "o_ln_g": stack_b("o_ln_g"), "o_ln_b": stack_b("o_ln_b"),
        "pool_w": p["pool_w"], "pool_b": p["pool_b"].reshape(1, HIDDEN),
        "head_w": jnp.concatenate([w for w, _ in p["heads"]], axis=1),
        "head_b": jnp.concatenate([b for _, b in p["heads"]], axis=0).reshape(1, TOTAL_CLASSES),
    }
    return packed


# ------------------------------ model forward ------------------------------------
def net_forward(packed, input_ids, segment_ids, input_mask):
    B, S = input_ids.shape
    # embedding gathers are plain-JAX glue
    pos = jnp.arange(S)
    emb = (packed["word_emb"][input_ids]
           + packed["pos_emb"][pos][None, :, :]
           + packed["type_emb"][segment_ids])
    emb_flat = emb.reshape(B * S, HIDDEN)

    attn_bias = (1.0 - input_mask.astype(jnp.float32)) * -10000.0       # (B, S)

    logits, norm_pooled = fused_forward(packed, emb_flat, attn_bias)

    # 'til' scenario: one output head per task (slice the concatenated logits)
    y = []
    off = 0
    for _, n in TASKCLA:
        y.append(logits[:, off:off + n])
        off += n

    return {"y": y, "normalized_pooled_rep": norm_pooled}


# ------------------------------------ main ---------------------------------------
if __name__ == "__main__":
    root = jax.random.PRNGKey(0)
    k_param, k_ids, k_seg = jax.random.split(root, 3)

    params = init_params(k_param)
    packed = pack_params(params)

    input_ids = jax.random.randint(k_ids, (BATCH, SEQ), 0, VOCAB, dtype=jnp.int32)
    segment_ids = jax.random.randint(k_seg, (BATCH, SEQ), 0, TYPE_VOCAB, dtype=jnp.int32)
    # second example has 2 padding positions to exercise the attention mask
    input_mask = jnp.array([[1] * SEQ, [1] * (SEQ - 2) + [0, 0]], dtype=jnp.int32)

    forward = jax.jit(net_forward)
    out = forward(packed, input_ids, segment_ids, input_mask)
    out = jax.tree_util.tree_map(lambda x: x.block_until_ready(), out)

    # light sanity checks on shapes / finiteness
    assert len(out["y"]) == len(TASKCLA)
    for (_, n), yi in zip(TASKCLA, out["y"]):
        assert yi.shape == (BATCH, n)
        assert bool(jnp.all(jnp.isfinite(yi)))
    assert out["normalized_pooled_rep"].shape == (BATCH, HIDDEN)
    assert bool(jnp.all(jnp.isfinite(out["normalized_pooled_rep"])))
    # unit-norm check for F.normalize output
    nrm = jnp.linalg.norm(out["normalized_pooled_rep"], axis=1)
    assert bool(jnp.all(jnp.abs(nrm - 1.0) < 1e-3))

    print("KERNEL_OK")
</pallas_src>

<mosaic_0001>
module attributes {stable_mosaic.version = 11 : i64} {
  func.func @_fused_forward_kernel(%arg0: memref<16x32xf32, #tpu.memory_space<vmem>>, %arg1: memref<2x8xf32, #tpu.memory_space<vmem>>, %arg2: memref<1x32xf32, #tpu.memory_space<vmem>>, %arg3: memref<1x32xf32, #tpu.memory_space<vmem>>, %arg4: memref<2x32x96xf32, #tpu.memory_space<vmem>>, %arg5: memref<2x1x96xf32, #tpu.memory_space<vmem>>, %arg6: memref<2x32x32xf32, #tpu.memory_space<vmem>>, %arg7: memref<2x1x32xf32, #tpu.memory_space<vmem>>, %arg8: memref<2x32x16xf32, #tpu.memory_space<vmem>>, %arg9: memref<2x1x16xf32, #tpu.memory_space<vmem>>, %arg10: memref<2x16x32xf32, #tpu.memory_space<vmem>>, %arg11: memref<2x1x32xf32, #tpu.memory_space<vmem>>, %arg12: memref<2x1x32xf32, #tpu.memory_space<vmem>>, %arg13: memref<2x1x32xf32, #tpu.memory_space<vmem>>, %arg14: memref<2x32x64xf32, #tpu.memory_space<vmem>>, %arg15: memref<2x1x64xf32, #tpu.memory_space<vmem>>, %arg16: memref<2x64x32xf32, #tpu.memory_space<vmem>>, %arg17: memref<2x1x32xf32, #tpu.memory_space<vmem>>, %arg18: memref<2x32x16xf32, #tpu.memory_space<vmem>>, %arg19: memref<2x1x16xf32, #tpu.memory_space<vmem>>, %arg20: memref<2x16x32xf32, #tpu.memory_space<vmem>>, %arg21: memref<2x1x32xf32, #tpu.memory_space<vmem>>, %arg22: memref<2x1x32xf32, #tpu.memory_space<vmem>>, %arg23: memref<2x1x32xf32, #tpu.memory_space<vmem>>, %arg24: memref<32x32xf32, #tpu.memory_space<vmem>>, %arg25: memref<1x32xf32, #tpu.memory_space<vmem>>, %arg26: memref<32x8xf32, #tpu.memory_space<vmem>>, %arg27: memref<1x8xf32, #tpu.memory_space<vmem>>, %arg28: memref<2x8xf32, #tpu.memory_space<vmem>>, %arg29: memref<2x32xf32, #tpu.memory_space<vmem>>, %arg30: memref<16x32xf32, #tpu.memory_space<vmem>>) attributes {dimension_semantics = [], scalar_prefetch = 0 : i64, scratch_operands = 1 : i64, tpu.core_type = #tpu.core_type<tc>} {
    %c0 = arith.constant 0 : index
    %c0_0 = arith.constant 0 : index
    %0 = vector.load %arg0[%c0, %c0_0] : memref<16x32xf32, #tpu.memory_space<vmem>>, vector<16x32xf32>
    %c0_1 = arith.constant 0 : index
    %c0_2 = arith.constant 0 : index
    %1 = vector.load %arg2[%c0_1, %c0_2] : memref<1x32xf32, #tpu.memory_space<vmem>>, vector<1x32xf32>
    %c0_3 = arith.constant 0 : index
    %c0_4 = arith.constant 0 : index
    %2 = vector.load %arg3[%c0_3, %c0_4] : memref<1x32xf32, #tpu.memory_space<vmem>>, vector<1x32xf32>
    %cst = arith.constant dense<0.000000e+00> : vector<16xf32>
    %3 = vector.multi_reduction <add>, %0, %cst [1] : vector<16x32xf32> to vector<16xf32>
    %4 = vector.shape_cast %3 : vector<16xf32> to vector<16x1xf32>
    %cst_5 = arith.constant 3.200000e+01 : f32
    %5 = vector.broadcast %cst_5 : f32 to vector<16x1xf32>
    %6 = arith.divf %4, %5 : vector<16x1xf32>
    %7 = vector.broadcast %6 : vector<16x1xf32> to vector<16x32xf32>
    %8 = arith.subf %0, %7 : vector<16x32xf32>
    %9 = arith.mulf %8, %8 : vector<16x32xf32>
    %cst_6 = arith.constant dense<0.000000e+00> : vector<16xf32>
    %10 = vector.multi_reduction <add>, %9, %cst_6 [1] : vector<16x32xf32> to vector<16xf32>
    %11 = vector.shape_cast %10 : vector<16xf32> to vector<16x1xf32>
    %cst_7 = arith.constant 3.200000e+01 : f32
    %12 = vector.broadcast %cst_7 : f32 to vector<16x1xf32>
    %13 = arith.divf %11, %12 : vector<16x1xf32>
    %14 = vector.broadcast %6 : vector<16x1xf32> to vector<16x32xf32>
    %15 = arith.subf %0, %14 : vector<16x32xf32>
    %cst_8 = arith.constant 9.99999996E-13 : f32
    %16 = vector.broadcast %cst_8 : f32 to vector<16x1xf32>
    %17 = arith.addf %13, %16 : vector<16x1xf32>
    %18 = math.rsqrt %17 : vector<16x1xf32>
    %19 = vector.broadcast %18 : vector<16x1xf32> to vector<16x32xf32>
    %20 = arith.mulf %15, %19 : vector<16x32xf32>
    %21 = vector.broadcast %1 : vector<1x32xf32> to vector<16x32xf32>
    %22 = arith.mulf %20, %21 : vector<16x32xf32>
    %23 = vector.broadcast %2 : vector<1x32xf32> to vector<16x32xf32>
    %24 = arith.addf %22, %23 : vector<16x32xf32>
    %c0_9 = arith.constant 0 : index
    %c0_10 = arith.constant 0 : index
    %25 = vector.load %arg1[%c0_9, %c0_10] : memref<2x8xf32, #tpu.memory_space<vmem>>, vector<2x8xf32>
    %c0_11 = arith.constant 0 : index
    %c0_12 = arith.constant 0 : index
    %c0_13 = arith.constant 0 : index
    %26 = vector.load %arg4[%c0_11, %c0_12, %c0_13] : memref<2x32x96xf32, #tpu.memory_space<vmem>>, vector<1x32x96xf32>
    %27 = vector.shape_cast %26 : vector<1x32x96xf32> to vector<32x96xf32>
    %cst_14 = arith.constant dense<0.000000e+00> : vector<16x96xf32>
    %28 = tpu.matmul %24, %27, %cst_14 {dimension_numbers = #tpu.dot_dimension_numbers<[1], [0], [0], [1], [0, 0, 1, 1], [], []>} : vector<16x32xf32>, vector<32x96xf32>, vector<16x96xf32> -> vector<16x96xf32>
    %c0_15 = arith.constant 0 : index
    %c0_16 = arith.constant 0 : index
    %c0_17 = arith.constant 0 : index
    %29 = vector.load %arg5[%c0_15, %c0_16, %c0_17] : memref<2x1x96xf32, #tpu.memory_space<vmem>>, vector<1x1x96xf32>
    %30 = vector.shape_cast %29 : vector<1x1x96xf32> to vector<1x96xf32>
    %31 = vector.broadcast %30 : vector<1x96xf32> to vector<16x96xf32>
    %32 = arith.addf %28, %31 : vector<16x96xf32>
    %33 = vector.extract_strided_slice %25 {offsets = [0, 0], sizes = [1, 8], strides = [1, 1]} : vector<2x8xf32> to vector<1x8xf32>
    %34 = vector.extract_strided_slice %32 {offsets = [0, 0], sizes = [8, 16], strides = [1, 1]} : vector<16x96xf32> to vector<8x16xf32>
    %35 = vector.extract_strided_slice %32 {offsets = [0, 32], sizes = [8, 16], strides = [1, 1]} : vector<16x96xf32> to vector<8x16xf32>
    %36 = vector.extract_strided_slice %32 {offsets = [0, 64], sizes = [8, 16], strides = [1, 1]} : vector<16x96xf32> to vector<8x16xf32>
    "tpu.trace_start"() <{level = 10 : i32, message = "qd,kd->qk"}> : () -> ()
    %cst_18 = arith.constant dense<0.000000e+00> : vector<8x8xf32>
    %37 = tpu.matmul %34, %35, %cst_18 {dimension_numbers = #tpu.dot_dimension_numbers<[1], [1], [0], [0], [0, 0, 1, 0], [], []>} : vector<8x16xf32>, vector<8x16xf32>, vector<8x8xf32> -> vector<8x8xf32>
    "tpu.trace_stop"() : () -> ()
    %cst_19 = arith.constant 2.500000e-01 : f32
    %38 = vector.broadcast %cst_19 : f32 to vector<8x8xf32>
    %39 = arith.mulf %37, %38 : vector<8x8xf32>
    %40 = vector.broadcast %33 : vector<1x8xf32> to vector<8x8xf32>
    %41 = arith.addf %39, %40 : vector<8x8xf32>
    %cst_20 = arith.constant dense<0xFF800000> : vector<8xf32>
    %42 = vector.multi_reduction <maximumf>, %41, %cst_20 [1] : vector<8x8xf32> to vector<8xf32>
    %43 = vector.shape_cast %42 : vector<8xf32> to vector<8x1xf32>
    %44 = vector.broadcast %43 : vector<8x1xf32> to vector<8x8xf32>
    %45 = arith.subf %41, %44 : vector<8x8xf32>
    %46 = math.exp %45 : vector<8x8xf32>
    %cst_21 = arith.constant dense<0.000000e+00> : vector<8xf32>
    %47 = vector.multi_reduction <add>, %46, %cst_21 [1] : vector<8x8xf32> to vector<8xf32>
    %48 = vector.shape_cast %47 : vector<8xf32> to vector<8x1xf32>
    %49 = tpu.reciprocal %48 {approx = true} : vector<8x1xf32> -> vector<8x1xf32>
    %50 = vector.broadcast %49 : vector<8x1xf32> to vector<8x8xf32>
    %51 = arith.mulf %46, %50 : vector<8x8xf32>
    %cst_22 = arith.constant dense<0.000000e+00> : vector<8x16xf32>
    %52 = tpu.matmul %51, %36, %cst_22 {dimension_numbers = #tpu.dot_dimension_numbers<[1], [0], [0], [1], [0, 0, 1, 1], [], []>} : vector<8x8xf32>, vector<8x16xf32>, vector<8x16xf32> -> vector<8x16xf32>
    %c0_23 = arith.constant 0 : index
    %c0_24 = arith.constant 0 : index
    %53 = vector.load %arg30[%c0_23, %c0_24] : memref<16x32xf32, #tpu.memory_space<vmem>>, vector<8x16xf32>
    tpu.vector_store %arg30[%c0_23, %c0_24], %52 {strides = array<i32>} : memref<16x32xf32, #tpu.memory_space<vmem>>, vector<8x16xf32>,
    %54 = vector.extract_strided_slice %32 {offsets = [0, 16], sizes = [8, 16], strides = [1, 1]} : vector<16x96xf32> to vector<8x16xf32>
    %55 = vector.extract_strided_slice %32 {offsets = [0, 48], sizes = [8, 16], strides = [1, 1]} : vector<16x96xf32> to vector<8x16xf32>
    %56 = vector.extract_strided_slice %32 {offsets = [0, 80], sizes = [8, 16], strides = [1, 1]} : vector<16x96xf32> to vector<8x16xf32>
    "tpu.trace_start"() <{level = 10 : i32, message = "qd,kd->qk"}> : () -> ()
    %cst_25 = arith.constant dense<0.000000e+00> : vector<8x8xf32>
    %57 = tpu.matmul %54, %55, %cst_25 {dimension_numbers = #tpu.dot_dimension_numbers<[1], [1], [0], [0], [0, 0, 1, 0], [], []>} : vector<8x16xf32>, vector<8x16xf32>, vector<8x8xf32> -> vector<8x8xf32>
    "tpu.trace_stop"() : () -> ()
    %cst_26 = arith.constant 2.500000e-01 : f32
    %58 = vector.broadcast %cst_26 : f32 to vector<8x8xf32>
    %59 = arith.mulf %57, %58 : vector<8x8xf32>
    %60 = vector.broadcast %33 : vector<1x8xf32> to vector<8x8xf32>
    %61 = arith.addf %59, %60 : vector<8x8xf32>
    %cst_27 = arith.constant dense<0xFF800000> : vector<8xf32>
    %62 = vector.multi_reduction <maximumf>, %61, %cst_27 [1] : vector<8x8xf32> to vector<8xf32>
    %63 = vector.shape_cast %62 : vector<8xf32> to vector<8x1xf32>
    %64 = vector.broadcast %63 : vector<8x1xf32> to vector<8x8xf32>
    %65 = arith.subf %61, %64 : vector<8x8xf32>
    %66 = math.exp %65 : vector<8x8xf32>
    %cst_28 = arith.constant dense<0.000000e+00> : vector<8xf32>
    %67 = vector.multi_reduction <add>, %66, %cst_28 [1] : vector<8x8xf32> to vector<8xf32>
    %68 = vector.shape_cast %67 : vector<8xf32> to vector<8x1xf32>
    %69 = tpu.reciprocal %68 {approx = true} : vector<8x1xf32> -> vector<8x1xf32>
    %70 = vector.broadcast %69 : vector<8x1xf32> to vector<8x8xf32>
    %71 = arith.mulf %66, %70 : vector<8x8xf32>
    %cst_29 = arith.constant dense<0.000000e+00> : vector<8x16xf32>
    %72 = tpu.matmul %71, %56, %cst_29 {dimension_numbers = #tpu.dot_dimension_numbers<[1], [0], [0], [1], [0, 0, 1, 1], [], []>} : vector<8x8xf32>, vector<8x16xf32>, vector<8x16xf32> -> vector<8x16xf32>
    %c0_30 = arith.constant 0 : index
    %c16 = arith.constant 16 : index
    %73 = vector.load %arg30[%c0_30, %c16] : memref<16x32xf32, #tpu.memory_space<vmem>>, vector<8x16xf32>
    tpu.vector_store %arg30[%c0_30, %c16], %72 {strides = array<i32>} : memref<16x32xf32, #tpu.memory_space<vmem>>, vector<8x16xf32>,
    %74 = vector.extract_strided_slice %25 {offsets = [1, 0], sizes = [1, 8], strides = [1, 1]} : vector<2x8xf32> to vector<1x8xf32>
    %75 = vector.extract_strided_slice %32 {offsets = [8, 0], sizes = [8, 16], strides = [1, 1]} : vector<16x96xf32> to vector<8x16xf32>
    %76 = vector.extract_strided_slice %32 {offsets = [8, 32], sizes = [8, 16], strides = [1, 1]} : vector<16x96xf32> to vector<8x16xf32>
    %77 = vector.extract_strided_slice %32 {offsets = [8, 64], sizes = [8, 16], strides = [1, 1]} : vector<16x96xf32> to vector<8x16xf32>
    "tpu.trace_start"() <{level = 10 : i32, message = "qd,kd->qk"}> : () -> ()
    %cst_31 = arith.constant dense<0.000000e+00> : vector<8x8xf32>
    %78 = tpu.matmul %75, %76, %cst_31 {dimension_numbers = #tpu.dot_dimension_numbers<[1], [1], [0], [0], [0, 0, 1, 0], [], []>} : vector<8x16xf32>, vector<8x16xf32>, vector<8x8xf32> -> vector<8x8xf32>
    "tpu.trace_stop"() : () -> ()
    %cst_32 = arith.constant 2.500000e-01 : f32
    %79 = vector.broadcast %cst_32 : f32 to vector<8x8xf32>
    %80 = arith.mulf %78, %79 : vector<8x8xf32>
    %81 = vector.broadcast %74 : vector<1x8xf32> to vector<8x8xf32>
    %82 = arith.addf %80, %81 : vector<8x8xf32>
    %cst_33 = arith.constant dense<0xFF800000> : vector<8xf32>
    %83 = vector.multi_reduction <maximumf>, %82, %cst_33 [1] : vector<8x8xf32> to vector<8xf32>
    %84 = vector.shape_cast %83 : vector<8xf32> to vector<8x1xf32>
    %85 = vector.broadcast %84 : vector<8x1xf32> to vector<8x8xf32>
    %86 = arith.subf %82, %85 : vector<8x8xf32>
    %87 = math.exp %86 : vector<8x8xf32>
    %cst_34 = arith.constant dense<0.000000e+00> : vector<8xf32>
    %88 = vector.multi_reduction <add>, %87, %cst_34 [1] : vector<8x8xf32> to vector<8xf32>
    %89 = vector.shape_cast %88 : vector<8xf32> to vector<8x1xf32>
    %90 = tpu.reciprocal %89 {approx = true} : vector<8x1xf32> -> vector<8x1xf32>
    %91 = vector.broadcast %90 : vector<8x1xf32> to vector<8x8xf32>
    %92 = arith.mulf %87, %91 : vector<8x8xf32>
    %cst_35 = arith.constant dense<0.000000e+00> : vector<8x16xf32>
    %93 = tpu.matmul %92, %77, %cst_35 {dimension_numbers = #tpu.dot_dimension_numbers<[1], [0], [0], [1], [0, 0, 1, 1], [], []>} : vector<8x8xf32>, vector<8x16xf32>, vector<8x16xf32> -> vector<8x16xf32>
    %c8 = arith.constant 8 : index
    %c0_36 = arith.constant 0 : index
    %94 = vector.load %arg30[%c8, %c0_36] : memref<16x32xf32, #tpu.memory_space<vmem>>, vector<8x16xf32>
    tpu.vector_store %arg30[%c8, %c0_36], %93 {strides = array<i32>} : memref<16x32xf32, #tpu.memory_space<vmem>>, vector<8x16xf32>,
    %95 = vector.extract_strided_slice %32 {offsets = [8, 16], sizes = [8, 16], strides = [1, 1]} : vector<16x96xf32> to vector<8x16xf32>
    %96 = vector.extract_strided_slice %32 {offsets = [8, 48], sizes = [8, 16], strides = [1, 1]} : vector<16x96xf32> to vector<8x16xf32>
    %97 = vector.extract_strided_slice %32 {offsets = [8, 80], sizes = [8, 16], strides = [1, 1]} : vector<16x96xf32> to vector<8x16xf32>
    "tpu.trace_start"() <{level = 10 : i32, message = "qd,kd->qk"}> : () -> ()
    %cst_37 = arith.constant dense<0.000000e+00> : vector<8x8xf32>
    %98 = tpu.matmul %95, %96, %cst_37 {dimension_numbers = #tpu.dot_dimension_numbers<[1], [1], [0], [0], [0, 0, 1, 0], [], []>} : vector<8x16xf32>, vector<8x16xf32>, vector<8x8xf32> -> vector<8x8xf32>
    "tpu.trace_stop"() : () -> ()
    %cst_38 = arith.constant 2.500000e-01 : f32
    %99 = vector.broadcast %cst_38 : f32 to vector<8x8xf32>
    %100 = arith.mulf %98, %99 : vector<8x8xf32>
    %101 = vector.broadcast %74 : vector<1x8xf32> to vector<8x8xf32>
    %102 = arith.addf %100, %101 : vector<8x8xf32>
    %cst_39 = arith.constant dense<0xFF800000> : vector<8xf32>
    %103 = vector.multi_reduction <maximumf>, %102, %cst_39 [1] : vector<8x8xf32> to vector<8xf32>
    %104 = vector.shape_cast %103 : vector<8xf32> to vector<8x1xf32>
    %105 = vector.broadcast %104 : vector<8x1xf32> to vector<8x8xf32>
    %106 = arith.subf %102, %105 : vector<8x8xf32>
    %107 = math.exp %106 : vector<8x8xf32>
    %cst_40 = arith.constant dense<0.000000e+00> : vector<8xf32>
    %108 = vector.multi_reduction <add>, %107, %cst_40 [1] : vector<8x8xf32> to vector<8xf32>
    %109 = vector.shape_cast %108 : vector<8xf32> to vector<8x1xf32>
    %110 = tpu.reciprocal %109 {approx = true} : vector<8x1xf32> -> vector<8x1xf32>
    %111 = vector.broadcast %110 : vector<8x1xf32> to vector<8x8xf32>
    %112 = arith.mulf %107, %111 : vector<8x8xf32>
    %cst_41 = arith.constant dense<0.000000e+00> : vector<8x16xf32>
    %113 = tpu.matmul %112, %97, %cst_41 {dimension_numbers = #tpu.dot_dimension_numbers<[1], [0], [0], [1], [0, 0, 1, 1], [], []>} : vector<8x8xf32>, vector<8x16xf32>, vector<8x16xf32> -> vector<8x16xf32>
    %c8_42 = arith.constant 8 : index
    %c16_43 = arith.constant 16 : index
    %114 = vector.load %arg30[%c8_42, %c16_43] : memref<16x32xf32, #tpu.memory_space<vmem>>, vector<8x16xf32>
    tpu.vector_store %arg30[%c8_42, %c16_43], %113 {strides = array<i32>} : memref<16x32xf32, #tpu.memory_space<vmem>>, vector<8x16xf32>,
    %c0_44 = arith.constant 0 : index
    %c0_45 = arith.constant 0 : index
    %115 = vector.load %arg30[%c0_44, %c0_45] : memref<16x32xf32, #tpu.memory_space<vmem>>, vector<16x32xf32>
    %c0_46 = arith.constant 0 : index
    %c0_47 = arith.constant 0 : index
    %c0_48 = arith.constant 0 : index
    %116 = vector.load %arg6[%c0_46, %c0_47, %c0_48] : memref<2x32x32xf32, #tpu.memory_space<vmem>>, vector<1x32x32xf32>
    %117 = vector.shape_cast %116 : vector<1x32x32xf32> to vector<32x32xf32>
    %cst_49 = arith.constant dense<0.000000e+00> : vector<16x32xf32>
    %118 = tpu.matmul %115, %117, %cst_49 {dimension_numbers = #tpu.dot_dimension_numbers<[1], [0], [0], [1], [0, 0, 1, 1], [], []>} : vector<16x32xf32>, vector<32x32xf32>, vector<16x32xf32> -> vector<16x32xf32>
    %c0_50 = arith.constant 0 : index
    %c0_51 = arith.constant 0 : index
    %c0_52 = arith.constant 0 : index
    %119 = vector.load %arg7[%c0_50, %c0_51, %c0_52] : memref<2x1x32xf32, #tpu.memory_space<vmem>>, vector<1x1x32xf32>
    %120 = vector.shape_cast %119 : vector<1x1x32xf32> to vector<1x32xf32>
    %121 = vector.broadcast %120 : vector<1x32xf32> to vector<16x32xf32>
    %122 = arith.addf %118, %121 : vector<16x32xf32>
    %c0_53 = arith.constant 0 : index
    %c0_54 = arith.constant 0 : index
    %c0_55 = arith.constant 0 : index
    %123 = vector.load %arg8[%c0_53, %c0_54, %c0_55] : memref<2x32x16xf32, #tpu.memory_space<vmem>>, vector<1x32x16xf32>
    %124 = vector.shape_cast %123 : vector<1x32x16xf32> to vector<32x16xf32>
    %cst_56 = arith.constant dense<0.000000e+00> : vector<16x16xf32>
    %125 = tpu.matmul %122, %124, %cst_56 {dimension_numbers = #tpu.dot_dimension_numbers<[1], [0], [0], [1], [0, 0, 1, 1], [], []>} : vector<16x32xf32>, vector<32x16xf32>, vector<16x16xf32> -> vector<16x16xf32>
    %c0_57 = arith.constant 0 : index
    %c0_58 = arith.constant 0 : index
    %c0_59 = arith.constant 0 : index
    %126 = vector.load %arg9[%c0_57, %c0_58, %c0_59] : memref<2x1x16xf32, #tpu.memory_space<vmem>>, vector<1x1x16xf32>
    %127 = vector.shape_cast %126 : vector<1x1x16xf32> to vector<1x16xf32>
    %128 = vector.broadcast %127 : vector<1x16xf32> to vector<16x16xf32>
    %129 = arith.addf %125, %128 : vector<16x16xf32>
    %cst_60 = arith.constant 5.000000e-01 : f32
    %130 = vector.broadcast %cst_60 : f32 to vector<16x16xf32>
    %131 = arith.mulf %130, %129 : vector<16x16xf32>
    %cst_61 = arith.constant 4.471500e-02 : f32
    %132 = vector.broadcast %cst_61 : f32 to vector<16x16xf32>
    %133 = arith.mulf %132, %129 : vector<16x16xf32>
    %134 = arith.mulf %133, %129 : vector<16x16xf32>
    %135 = arith.mulf %134, %129 : vector<16x16xf32>
    %136 = arith.addf %129, %135 : vector<16x16xf32>
    %cst_62 = arith.constant 0.797884583 : f32
    %137 = vector.broadcast %cst_62 : f32 to vector<16x16xf32>
    %138 = arith.mulf %137, %136 : vector<16x16xf32>
    %139 = math.tanh %138 : vector<16x16xf32>
    %cst_63 = arith.constant 1.000000e+00 : f32
    %140 = vector.broadcast %cst_63 : f32 to vector<16x16xf32>
    %141 = arith.addf %140, %139 : vector<16x16xf32>
    %142 = arith.mulf %131, %141 : vector<16x16xf32>
    %c0_64 = arith.constant 0 : index
    %c0_65 = arith.constant 0 : index
    %c0_66 = arith.constant 0 : index
    %143 = vector.load %arg10[%c0_64, %c0_65, %c0_66] : memref<2x16x32xf32, #tpu.memory_space<vmem>>, vector<1x16x32xf32>
    %144 = vector.shape_cast %143 : vector<1x16x32xf32> to vector<16x32xf32>
    %cst_67 = arith.constant dense<0.000000e+00> : vector<16x32xf32>
    %145 = tpu.matmul %142, %144, %cst_67 {dimension_numbers = #tpu.dot_dimension_numbers<[1], [0], [0], [1], [0, 0, 1, 1], [], []>} : vector<16x16xf32>, vector<16x32xf32>, vector<16x32xf32> -> vector<16x32xf32>
    %146 = arith.addf %122, %145 : vector<16x32xf32>
    %c0_68 = arith.constant 0 : index
    %c0_69 = arith.constant 0 : index
    %c0_70 = arith.constant 0 : index
    %147 = vector.load %arg11[%c0_68, %c0_69, %c0_70] : memref<2x1x32xf32, #tpu.memory_space<vmem>>, vector<1x1x32xf32>
    %148 = vector.shape_cast %147 : vector<1x1x32xf32> to vector<1x32xf32>
    %149 = vector.broadcast %148 : vector<1x32xf32> to vector<16x32xf32>
    %150 = arith.addf %146, %149 : vector<16x32xf32>
    %151 = arith.addf %150, %24 : vector<16x32xf32>
    %c0_71 = arith.constant 0 : index
    %c0_72 = arith.constant 0 : index
    %c0_73 = arith.constant 0 : index
    %152 = vector.load %arg12[%c0_71, %c0_72, %c0_73] : memref<2x1x32xf32, #tpu.memory_space<vmem>>, vector<1x1x32xf32>
    %153 = vector.shape_cast %152 : vector<1x1x32xf32> to vector<1x32xf32>
    %c0_74 = arith.constant 0 : index
    %c0_75 = arith.constant 0 : index
    %c0_76 = arith.constant 0 : index
    %154 = vector.load %arg13[%c0_74, %c0_75, %c0_76] : memref<2x1x32xf32, #tpu.memory_space<vmem>>, vector<1x1x32xf32>
    %155 = vector.shape_cast %154 : vector<1x1x32xf32> to vector<1x32xf32>
    %cst_77 = arith.constant dense<0.000000e+00> : vector<16xf32>
    %156 = vector.multi_reduction <add>, %151, %cst_77 [1] : vector<16x32xf32> to vector<16xf32>
    %157 = vector.shape_cast %156 : vector<16xf32> to vector<16x1xf32>
    %cst_78 = arith.constant 3.200000e+01 : f32
    %158 = vector.broadcast %cst_78 : f32 to vector<16x1xf32>
    %159 = arith.divf %157, %158 : vector<16x1xf32>
    %160 = vector.broadcast %159 : vector<16x1xf32> to vector<16x32xf32>
    %161 = arith.subf %151, %160 : vector<16x32xf32>
    %162 = arith.mulf %161, %161 : vector<16x32xf32>
    %cst_79 = arith.constant dense<0.000000e+00> : vector<16xf32>
    %163 = vector.multi_reduction <add>, %162, %cst_79 [1] : vector<16x32xf32> to vector<16xf32>
    %164 = vector.shape_cast %163 : vector<16xf32> to vector<16x1xf32>
    %cst_80 = arith.constant 3.200000e+01 : f32
    %165 = vector.broadcast %cst_80 : f32 to vector<16x1xf32>
    %166 = arith.divf %164, %165 : vector<16x1xf32>
    %167 = vector.broadcast %159 : vector<16x1xf32> to vector<16x32xf32>
    %168 = arith.subf %151, %167 : vector<16x32xf32>
    %cst_81 = arith.constant 9.99999996E-13 : f32
    %169 = vector.broadcast %cst_81 : f32 to vector<16x1xf32>
    %170 = arith.addf %166, %169 : vector<16x1xf32>
    %171 = math.rsqrt %170 : vector<16x1xf32>
    %172 = vector.broadcast %171 : vector<16x1xf32> to vector<16x32xf32>
    %173 = arith.mulf %168, %172 : vector<16x32xf32>
    %174 = vector.broadcast %153 : vector<1x32xf32> to vector<16x32xf32>
    %175 = arith.mulf %173, %174 : vector<16x32xf32>
    %176 = vector.broadcast %155 : vector<1x32xf32> to vector<16x32xf32>
    %177 = arith.addf %175, %176 : vector<16x32xf32>
    %c0_82 = arith.constant 0 : index
    %c0_83 = arith.constant 0 : index
    %c0_84 = arith.constant 0 : index
    %178 = vector.load %arg14[%c0_82, %c0_83, %c0_84] : memref<2x32x64xf32, #tpu.memory_space<vmem>>, vector<1x32x64xf32>
    %179 = vector.shape_cast %178 : vector<1x32x64xf32> to vector<32x64xf32>
    %cst_85 = arith.constant dense<0.000000e+00> : vector<16x64xf32>
    %180 = tpu.matmul %177, %179, %cst_85 {dimension_numbers = #tpu.dot_dimension_numbers<[1], [0], [0], [1], [0, 0, 1, 1], [], []>} : vector<16x32xf32>, vector<32x64xf32>, vector<16x64xf32> -> vector<16x64xf32>
    %c0_86 = arith.constant 0 : index
    %c0_87 = arith.constant 0 : index
    %c0_88 = arith.constant 0 : index
    %181 = vector.load %arg15[%c0_86, %c0_87, %c0_88] : memref<2x1x64xf32, #tpu.memory_space<vmem>>, vector<1x1x64xf32>
    %182 = vector.shape_cast %181 : vector<1x1x64xf32> to vector<1x64xf32>
    %183 = vector.broadcast %182 : vector<1x64xf32> to vector<16x64xf32>
    %184 = arith.addf %180, %183 : vector<16x64xf32>
    %cst_89 = arith.constant 5.000000e-01 : f32
    %185 = vector.broadcast %cst_89 : f32 to vector<16x64xf32>
    %186 = arith.mulf %185, %184 : vector<16x64xf32>
    %cst_90 = arith.constant 4.471500e-02 : f32
    %187 = vector.broadcast %cst_90 : f32 to vector<16x64xf32>
    %188 = arith.mulf %187, %184 : vector<16x64xf32>
    %189 = arith.mulf %188, %184 : vector<16x64xf32>
    %190 = arith.mulf %189, %184 : vector<16x64xf32>
    %191 = arith.addf %184, %190 : vector<16x64xf32>
    %cst_91 = arith.constant 0.797884583 : f32
    %192 = vector.broadcast %cst_91 : f32 to vector<16x64xf32>
    %193 = arith.mulf %192, %191 : vector<16x64xf32>
    %194 = math.tanh %193 : vector<16x64xf32>
    %cst_92 = arith.constant 1.000000e+00 : f32
    %195 = vector.broadcast %cst_92 : f32 to vector<16x64xf32>
    %196 = arith.addf %195, %194 : vector<16x64xf32>
    %197 = arith.mulf %186, %196 : vector<16x64xf32>
    %c0_93 = arith.constant 0 : index
    %c0_94 = arith.constant 0 : index
    %c0_95 = arith.constant 0 : index
    %198 = vector.load %arg16[%c0_93, %c0_94, %c0_95] : memref<2x64x32xf32, #tpu.memory_space<vmem>>, vector<1x64x32xf32>
    %199 = vector.shape_cast %198 : vector<1x64x32xf32> to vector<64x32xf32>
    %cst_96 = arith.constant dense<0.000000e+00> : vector<16x32xf32>
    %200 = tpu.matmul %197, %199, %cst_96 {dimension_numbers = #tpu.dot_dimension_numbers<[1], [0], [0], [1], [0, 0, 1, 1], [], []>} : vector<16x64xf32>, vector<64x32xf32>, vector<16x32xf32> -> vector<16x32xf32>
    %c0_97 = arith.constant 0 : index
    %c0_98 = arith.constant 0 : index
    %c0_99 = arith.constant 0 : index
    %201 = vector.load %arg17[%c0_97, %c0_98, %c0_99] : memref<2x1x32xf32, #tpu.memory_space<vmem>>, vector<1x1x32xf32>
    %202 = vector.shape_cast %201 : vector<1x1x32xf32> to vector<1x32xf32>
    %203 = vector.broadcast %202 : vector<1x32xf32> to vector<16x32xf32>
    %204 = arith.addf %200, %203 : vector<16x32xf32>
    %c0_100 = arith.constant 0 : index
    %c0_101 = arith.constant 0 : index
    %c0_102 = arith.constant 0 : index
    %205 = vector.load %arg18[%c0_100, %c0_101, %c0_102] : memref<2x32x16xf32, #tpu.memory_space<vmem>>, vector<1x32x16xf32>
    %206 = vector.shape_cast %205 : vector<1x32x16xf32> to vector<32x16xf32>
    %cst_103 = arith.constant dense<0.000000e+00> : vector<16x16xf32>
    %207 = tpu.matmul %204, %206, %cst_103 {dimension_numbers = #tpu.dot_dimension_numbers<[1], [0], [0], [1], [0, 0, 1, 1], [], []>} : vector<16x32xf32>, vector<32x16xf32>, vector<16x16xf32> -> vector<16x16xf32>
    %c0_104 = arith.constant 0 : index
    %c0_105 = arith.constant 0 : index
    %c0_106 = arith.constant 0 : index
    %208 = vector.load %arg19[%c0_104, %c0_105, %c0_106] : memref<2x1x16xf32, #tpu.memory_space<vmem>>, vector<1x1x16xf32>
    %209 = vector.shape_cast %208 : vector<1x1x16xf32> to vector<1x16xf32>
    %210 = vector.broadcast %209 : vector<1x16xf32> to vector<16x16xf32>
    %211 = arith.addf %207, %210 : vector<16x16xf32>
    %cst_107 = arith.constant 5.000000e-01 : f32
    %212 = vector.broadcast %cst_107 : f32 to vector<16x16xf32>
    %213 = arith.mulf %212, %211 : vector<16x16xf32>
    %cst_108 = arith.constant 4.471500e-02 : f32
    %214 = vector.broadcast %cst_108 : f32 to vector<16x16xf32>
    %215 = arith.mulf %214, %211 : vector<16x16xf32>
    %216 = arith.mulf %215, %211 : vector<16x16xf32>
    %217 = arith.mulf %216, %211 : vector<16x16xf32>
    %218 = arith.addf %211, %217 : vector<16x16xf32>
    %cst_109 = arith.constant 0.797884583 : f32
    %219 = vector.broadcast %cst_109 : f32 to vector<16x16xf32>
    %220 = arith.mulf %219, %218 : vector<16x16xf32>
    %221 = math.tanh %220 : vector<16x16xf32>
    %cst_110 = arith.constant 1.000000e+00 : f32
    %222 = vector.broadcast %cst_110 : f32 to vector<16x16xf32>
    %223 = arith.addf %222, %221 : vector<16x16xf32>
    %224 = arith.mulf %213, %223 : vector<16x16xf32>
    %c0_111 = arith.constant 0 : index
    %c0_112 = arith.constant 0 : index
    %c0_113 = arith.constant 0 : index
    %225 = vector.load %arg20[%c0_111, %c0_112, %c0_113] : memref<2x16x32xf32, #tpu.memory_space<vmem>>, vector<1x16x32xf32>
    %226 = vector.shape_cast %225 : vector<1x16x32xf32> to vector<16x32xf32>
    %cst_114 = arith.constant dense<0.000000e+00> : vector<16x32xf32>
    %227 = tpu.matmul %224, %226, %cst_114 {dimension_numbers = #tpu.dot_dimension_numbers<[1], [0], [0], [1], [0, 0, 1, 1], [], []>} : vector<16x16xf32>, vector<16x32xf32>, vector<16x32xf32> -> vector<16x32xf32>
    %228 = arith.addf %204, %227 : vector<16x32xf32>
    %c0_115 = arith.constant 0 : index
    %c0_116 = arith.constant 0 : index
    %c0_117 = arith.constant 0 : index
    %229 = vector.load %arg21[%c0_115, %c0_116, %c0_117] : memref<2x1x32xf32, #tpu.memory_space<vmem>>, vector<1x1x32xf32>
    %230 = vector.shape_cast %229 : vector<1x1x32xf32> to vector<1x32xf32>
    %231 = vector.broadcast %230 : vector<1x32xf32> to vector<16x32xf32>
    %232 = arith.addf %228, %231 : vector<16x32xf32>
    %233 = arith.addf %232, %177 : vector<16x32xf32>
    %c0_118 = arith.constant 0 : index
    %c0_119 = arith.constant 0 : index
    %c0_120 = arith.constant 0 : index
    %234 = vector.load %arg22[%c0_118, %c0_119, %c0_120] : memref<2x1x32xf32, #tpu.memory_space<vmem>>, vector<1x1x32xf32>
    %235 = vector.shape_cast %234 : vector<1x1x32xf32> to vector<1x32xf32>
    %c0_121 = arith.constant 0 : index
    %c0_122 = arith.constant 0 : index
    %c0_123 = arith.constant 0 : index
    %236 = vector.load %arg23[%c0_121, %c0_122, %c0_123] : memref<2x1x32xf32, #tpu.memory_space<vmem>>, vector<1x1x32xf32>
    %237 = vector.shape_cast %236 : vector<1x1x32xf32> to vector<1x32xf32>
    %cst_124 = arith.constant dense<0.000000e+00> : vector<16xf32>
    %238 = vector.multi_reduction <add>, %233, %cst_124 [1] : vector<16x32xf32> to vector<16xf32>
    %239 = vector.shape_cast %238 : vector<16xf32> to vector<16x1xf32>
    %cst_125 = arith.constant 3.200000e+01 : f32
    %240 = vector.broadcast %cst_125 : f32 to vector<16x1xf32>
    %241 = arith.divf %239, %240 : vector<16x1xf32>
    %242 = vector.broadcast %241 : vector<16x1xf32> to vector<16x32xf32>
    %243 = arith.subf %233, %242 : vector<16x32xf32>
    %244 = arith.mulf %243, %243 : vector<16x32xf32>
    %cst_126 = arith.constant dense<0.000000e+00> : vector<16xf32>
    %245 = vector.multi_reduction <add>, %244, %cst_126 [1] : vector<16x32xf32> to vector<16xf32>
    %246 = vector.shape_cast %245 : vector<16xf32> to vector<16x1xf32>
    %cst_127 = arith.constant 3.200000e+01 : f32
    %247 = vector.broadcast %cst_127 : f32 to vector<16x1xf32>
    %248 = arith.divf %246, %247 : vector<16x1xf32>
    %249 = vector.broadcast %241 : vector<16x1xf32> to vector<16x32xf32>
    %250 = arith.subf %233, %249 : vector<16x32xf32>
    %cst_128 = arith.constant 9.99999996E-13 : f32
    %251 = vector.broadcast %cst_128 : f32 to vector<16x1xf32>
    %252 = arith.addf %248, %251 : vector<16x1xf32>
    %253 = math.rsqrt %252 : vector<16x1xf32>
    %254 = vector.broadcast %253 : vector<16x1xf32> to vector<16x32xf32>
    %255 = arith.mulf %250, %254 : vector<16x32xf32>
    %256 = vector.broadcast %235 : vector<1x32xf32> to vector<16x32xf32>
    %257 = arith.mulf %255, %256 : vector<16x32xf32>
    %258 = vector.broadcast %237 : vector<1x32xf32> to vector<16x32xf32>
    %259 = arith.addf %257, %258 : vector<16x32xf32>
    %c1 = arith.constant 1 : index
    %c0_129 = arith.constant 0 : index
    %c0_130 = arith.constant 0 : index
    %260 = vector.load %arg4[%c1, %c0_129, %c0_130] : memref<2x32x96xf32, #tpu.memory_space<vmem>>, vector<1x32x96xf32>
    %261 = vector.shape_cast %260 : vector<1x32x96xf32> to vector<32x96xf32>
    %cst_131 = arith.constant dense<0.000000e+00> : vector<16x96xf32>
    %262 = tpu.matmul %259, %261, %cst_131 {dimension_numbers = #tpu.dot_dimension_numbers<[1], [0], [0], [1], [0, 0, 1, 1], [], []>} : vector<16x32xf32>, vector<32x96xf32>, vector<16x96xf32> -> vector<16x96xf32>
    %c1_132 = arith.constant 1 : index
    %c0_133 = arith.constant 0 : index
    %c0_134 = arith.constant 0 : index
    %263 = vector.load %arg5[%c1_132, %c0_133, %c0_134] : memref<2x1x96xf32, #tpu.memory_space<vmem>>, vector<1x1x96xf32>
    %264 = vector.shape_cast %263 : vector<1x1x96xf32> to vector<1x96xf32>
    %265 = vector.broadcast %264 : vector<1x96xf32> to vector<16x96xf32>
    %266 = arith.addf %262, %265 : vector<16x96xf32>
    %267 = vector.extract_strided_slice %25 {offsets = [0, 0], sizes = [1, 8], strides = [1, 1]} : vector<2x8xf32> to vector<1x8xf32>
    %268 = vector.extract_strided_slice %266 {offsets = [0, 0], sizes = [8, 16], strides = [1, 1]} : vector<16x96xf32> to vector<8x16xf32>
    %269 = vector.extract_strided_slice %266 {offsets = [0, 32], sizes = [8, 16], strides = [1, 1]} : vector<16x96xf32> to vector<8x16xf32>
    %270 = vector.extract_strided_slice %266 {offsets = [0, 64], sizes = [8, 16], strides = [1, 1]} : vector<16x96xf32> to vector<8x16xf32>
    "tpu.trace_start"() <{level = 10 : i32, message = "qd,kd->qk"}> : () -> ()
    %cst_135 = arith.constant dense<0.000000e+00> : vector<8x8xf32>
    %271 = tpu.matmul %268, %269, %cst_135 {dimension_numbers = #tpu.dot_dimension_numbers<[1], [1], [0], [0], [0, 0, 1, 0], [], []>} : vector<8x16xf32>, vector<8x16xf32>, vector<8x8xf32> -> vector<8x8xf32>
    "tpu.trace_stop"() : () -> ()
    %cst_136 = arith.constant 2.500000e-01 : f32
    %272 = vector.broadcast %cst_136 : f32 to vector<8x8xf32>
    %273 = arith.mulf %271, %272 : vector<8x8xf32>
    %274 = vector.broadcast %267 : vector<1x8xf32> to vector<8x8xf32>
    %275 = arith.addf %273, %274 : vector<8x8xf32>
    %cst_137 = arith.constant dense<0xFF800000> : vector<8xf32>
    %276 = vector.multi_reduction <maximumf>, %275, %cst_137 [1] : vector<8x8xf32> to vector<8xf32>
    %277 = vector.shape_cast %276 : vector<8xf32> to vector<8x1xf32>
    %278 = vector.broadcast %277 : vector<8x1xf32> to vector<8x8xf32>
    %279 = arith.subf %275, %278 : vector<8x8xf32>
    %280 = math.exp %279 : vector<8x8xf32>
    %cst_138 = arith.constant dense<0.000000e+00> : vector<8xf32>
    %281 = vector.multi_reduction <add>, %280, %cst_138 [1] : vector<8x8xf32> to vector<8xf32>
    %282 = vector.shape_cast %281 : vector<8xf32> to vector<8x1xf32>
    %283 = tpu.reciprocal %282 {approx = true} : vector<8x1xf32> -> vector<8x1xf32>
    %284 = vector.broadcast %283 : vector<8x1xf32> to vector<8x8xf32>
    %285 = arith.mulf %280, %284 : vector<8x8xf32>
    %cst_139 = arith.constant dense<0.000000e+00> : vector<8x16xf32>
    %286 = tpu.matmul %285, %270, %cst_139 {dimension_numbers = #tpu.dot_dimension_numbers<[1], [0], [0], [1], [0, 0, 1, 1], [], []>} : vector<8x8xf32>, vector<8x16xf32>, vector<8x16xf32> -> vector<8x16xf32>
    %c0_140 = arith.constant 0 : index
    %c0_141 = arith.constant 0 : index
    %287 = vector.load %arg30[%c0_140, %c0_141] : memref<16x32xf32, #tpu.memory_space<vmem>>, vector<8x16xf32>
    tpu.vector_store %arg30[%c0_140, %c0_141], %286 {strides = array<i32>} : memref<16x32xf32, #tpu.memory_space<vmem>>, vector<8x16xf32>,
    %288 = vector.extract_strided_slice %266 {offsets = [0, 16], sizes = [8, 16], strides = [1, 1]} : vector<16x96xf32> to vector<8x16xf32>
    %289 = vector.extract_strided_slice %266 {offsets = [0, 48], sizes = [8, 16], strides = [1, 1]} : vector<16x96xf32> to vector<8x16xf32>
    %290 = vector.extract_strided_slice %266 {offsets = [0, 80], sizes = [8, 16], strides = [1, 1]} : vector<16x96xf32> to vector<8x16xf32>
    "tpu.trace_start"() <{level = 10 : i32, message = "qd,kd->qk"}> : () -> ()
    %cst_142 = arith.constant dense<0.000000e+00> : vector<8x8xf32>
    %291 = tpu.matmul %288, %289, %cst_142 {dimension_numbers = #tpu.dot_dimension_numbers<[1], [1], [0], [0], [0, 0, 1, 0], [], []>} : vector<8x16xf32>, vector<8x16xf32>, vector<8x8xf32> -> vector<8x8xf32>
    "tpu.trace_stop"() : () -> ()
    %cst_143 = arith.constant 2.500000e-01 : f32
    %292 = vector.broadcast %cst_143 : f32 to vector<8x8xf32>
    %293 = arith.mulf %291, %292 : vector<8x8xf32>
    %294 = vector.broadcast %267 : vector<1x8xf32> to vector<8x8xf32>
    %295 = arith.addf %293, %294 : vector<8x8xf32>
    %cst_144 = arith.constant dense<0xFF800000> : vector<8xf32>
    %296 = vector.multi_reduction <maximumf>, %295, %cst_144 [1] : vector<8x8xf32> to vector<8xf32>
    %297 = vector.shape_cast %296 : vector<8xf32> to vector<8x1xf32>
    %298 = vector.broadcast %297 : vector<8x1xf32> to vector<8x8xf32>
    %299 = arith.subf %295, %298 : vector<8x8xf32>
    %300 = math.exp %299 : vector<8x8xf32>
    %cst_145 = arith.constant dense<0.000000e+00> : vector<8xf32>
    %301 = vector.multi_reduction <add>, %300, %cst_145 [1] : vector<8x8xf32> to vector<8xf32>
    %302 = vector.shape_cast %301 : vector<8xf32> to vector<8x1xf32>
    %303 = tpu.reciprocal %302 {approx = true} : vector<8x1xf32> -> vector<8x1xf32>
    %304 = vector.broadcast %303 : vector<8x1xf32> to vector<8x8xf32>
    %305 = arith.mulf %300, %304 : vector<8x8xf32>
    %cst_146 = arith.constant dense<0.000000e+00> : vector<8x16xf32>
    %306 = tpu.matmul %305, %290, %cst_146 {dimension_numbers = #tpu.dot_dimension_numbers<[1], [0], [0], [1], [0, 0, 1, 1], [], []>} : vector<8x8xf32>, vector<8x16xf32>, vector<8x16xf32> -> vector<8x16xf32>
    %c0_147 = arith.constant 0 : index
    %c16_148 = arith.constant 16 : index
    %307 = vector.load %arg30[%c0_147, %c16_148] : memref<16x32xf32, #tpu.memory_space<vmem>>, vector<8x16xf32>
    tpu.vector_store %arg30[%c0_147, %c16_148], %306 {strides = array<i32>} : memref<16x32xf32, #tpu.memory_space<vmem>>, vector<8x16xf32>,
    %308 = vector.extract_strided_slice %25 {offsets = [1, 0], sizes = [1, 8], strides = [1, 1]} : vector<2x8xf32> to vector<1x8xf32>
    %309 = vector.extract_strided_slice %266 {offsets = [8, 0], sizes = [8, 16], strides = [1, 1]} : vector<16x96xf32> to vector<8x16xf32>
    %310 = vector.extract_strided_slice %266 {offsets = [8, 32], sizes = [8, 16], strides = [1, 1]} : vector<16x96xf32> to vector<8x16xf32>
    %311 = vector.extract_strided_slice %266 {offsets = [8, 64], sizes = [8, 16], strides = [1, 1]} : vector<16x96xf32> to vector<8x16xf32>
    "tpu.trace_start"() <{level = 10 : i32, message = "qd,kd->qk"}> : () -> ()
    %cst_149 = arith.constant dense<0.000000e+00> : vector<8x8xf32>
    %312 = tpu.matmul %309, %310, %cst_149 {dimension_numbers = #tpu.dot_dimension_numbers<[1], [1], [0], [0], [0, 0, 1, 0], [], []>} : vector<8x16xf32>, vector<8x16xf32>, vector<8x8xf32> -> vector<8x8xf32>
    "tpu.trace_stop"() : () -> ()
    %cst_150 = arith.constant 2.500000e-01 : f32
    %313 = vector.broadcast %cst_150 : f32 to vector<8x8xf32>
    %314 = arith.mulf %312, %313 : vector<8x8xf32>
    %315 = vector.broadcast %308 : vector<1x8xf32> to vector<8x8xf32>
    %316 = arith.addf %314, %315 : vector<8x8xf32>
    %cst_151 = arith.constant dense<0xFF800000> : vector<8xf32>
    %317 = vector.multi_reduction <maximumf>, %316, %cst_151 [1] : vector<8x8xf32> to vector<8xf32>
    %318 = vector.shape_cast %317 : vector<8xf32> to vector<8x1xf32>
    %319 = vector.broadcast %318 : vector<8x1xf32> to vector<8x8xf32>
    %320 = arith.subf %316, %319 : vector<8x8xf32>
    %321 = math.exp %320 : vector<8x8xf32>
    %cst_152 = arith.constant dense<0.000000e+00> : vector<8xf32>
    %322 = vector.multi_reduction <add>, %321, %cst_152 [1] : vector<8x8xf32> to vector<8xf32>
    %323 = vector.shape_cast %322 : vector<8xf32> to vector<8x1xf32>
    %324 = tpu.reciprocal %323 {approx = true} : vector<8x1xf32> -> vector<8x1xf32>
    %325 = vector.broadcast %324 : vector<8x1xf32> to vector<8x8xf32>
    %326 = arith.mulf %321, %325 : vector<8x8xf32>
    %cst_153 = arith.constant dense<0.000000e+00> : vector<8x16xf32>
    %327 = tpu.matmul %326, %311, %cst_153 {dimension_numbers = #tpu.dot_dimension_numbers<[1], [0], [0], [1], [0, 0, 1, 1], [], []>} : vector<8x8xf32>, vector<8x16xf32>, vector<8x16xf32> -> vector<8x16xf32>
    %c8_154 = arith.constant 8 : index
    %c0_155 = arith.constant 0 : index
    %328 = vector.load %arg30[%c8_154, %c0_155] : memref<16x32xf32, #tpu.memory_space<vmem>>, vector<8x16xf32>
    tpu.vector_store %arg30[%c8_154, %c0_155], %327 {strides = array<i32>} : memref<16x32xf32, #tpu.memory_space<vmem>>, vector<8x16xf32>,
    %329 = vector.extract_strided_slice %266 {offsets = [8, 16], sizes = [8, 16], strides = [1, 1]} : vector<16x96xf32> to vector<8x16xf32>
    %330 = vector.extract_strided_slice %266 {offsets = [8, 48], sizes = [8, 16], strides = [1, 1]} : vector<16x96xf32> to vector<8x16xf32>
    %331 = vector.extract_strided_slice %266 {offsets = [8, 80], sizes = [8, 16], strides = [1, 1]} : vector<16x96xf32> to vector<8x16xf32>
    "tpu.trace_start"() <{level = 10 : i32, message = "qd,kd->qk"}> : () -> ()
    %cst_156 = arith.constant dense<0.000000e+00> : vector<8x8xf32>
    %332 = tpu.matmul %329, %330, %cst_156 {dimension_numbers = #tpu.dot_dimension_numbers<[1], [1], [0], [0], [0, 0, 1, 0], [], []>} : vector<8x16xf32>, vector<8x16xf32>, vector<8x8xf32> -> vector<8x8xf32>
    "tpu.trace_stop"() : () -> ()
    %cst_157 = arith.constant 2.500000e-01 : f32
    %333 = vector.broadcast %cst_157 : f32 to vector<8x8xf32>
    %334 = arith.mulf %332, %333 : vector<8x8xf32>
    %335 = vector.broadcast %308 : vector<1x8xf32> to vector<8x8xf32>
    %336 = arith.addf %334, %335 : vector<8x8xf32>
    %cst_158 = arith.constant dense<0xFF800000> : vector<8xf32>
    %337 = vector.multi_reduction <maximumf>, %336, %cst_158 [1] : vector<8x8xf32> to vector<8xf32>
    %338 = vector.shape_cast %337 : vector<8xf32> to vector<8x1xf32>
    %339 = vector.broadcast %338 : vector<8x1xf32> to vector<8x8xf32>
    %340 = arith.subf %336, %339 : vector<8x8xf32>
    %341 = math.exp %340 : vector<8x8xf32>
    %cst_159 = arith.constant dense<0.000000e+00> : vector<8xf32>
    %342 = vector.multi_reduction <add>, %341, %cst_159 [1] : vector<8x8xf32> to vector<8xf32>
    %343 = vector.shape_cast %342 : vector<8xf32> to vector<8x1xf32>
    %344 = tpu.reciprocal %343 {approx = true} : vector<8x1xf32> -> vector<8x1xf32>
    %345 = vector.broadcast %344 : vector<8x1xf32> to vector<8x8xf32>
    %346 = arith.mulf %341, %345 : vector<8x8xf32>
    %cst_160 = arith.constant dense<0.000000e+00> : vector<8x16xf32>
    %347 = tpu.matmul %346, %331, %cst_160 {dimension_numbers = #tpu.dot_dimension_numbers<[1], [0], [0], [1], [0, 0, 1, 1], [], []>} : vector<8x8xf32>, vector<8x16xf32>, vector<8x16xf32> -> vector<8x16xf32>
    %c8_161 = arith.constant 8 : index
    %c16_162 = arith.constant 16 : index
    %348 = vector.load %arg30[%c8_161, %c16_162] : memref<16x32xf32, #tpu.memory_space<vmem>>, vector<8x16xf32>
    tpu.vector_store %arg30[%c8_161, %c16_162], %347 {strides = array<i32>} : memref<16x32xf32, #tpu.memory_space<vmem>>, vector<8x16xf32>,
    %c0_163 = arith.constant 0 : index
    %c0_164 = arith.constant 0 : index
    %349 = vector.load %arg30[%c0_163, %c0_164] : memref<16x32xf32, #tpu.memory_space<vmem>>, vector<16x32xf32>
    %c1_165 = arith.constant 1 : index
    %c0_166 = arith.constant 0 : index
    %c0_167 = arith.constant 0 : index
    %350 = vector.load %arg6[%c1_165, %c0_166, %c0_167] : memref<2x32x32xf32, #tpu.memory_space<vmem>>, vector<1x32x32xf32>
    %351 = vector.shape_cast %350 : vector<1x32x32xf32> to vector<32x32xf32>
    %cst_168 = arith.constant dense<0.000000e+00> : vector<16x32xf32>
    %352 = tpu.matmul %349, %351, %cst_168 {dimension_numbers = #tpu.dot_dimension_numbers<[1], [0], [0], [1], [0, 0, 1, 1], [], []>} : vector<16x32xf32>, vector<32x32xf32>, vector<16x32xf32> -> vector<16x32xf32>
    %c1_169 = arith.constant 1 : index
    %c0_170 = arith.constant 0 : index
    %c0_171 = arith.constant 0 : index
    %353 = vector.load %arg7[%c1_169, %c0_170, %c0_171] : memref<2x1x32xf32, #tpu.memory_space<vmem>>, vector<1x1x32xf32>
    %354 = vector.shape_cast %353 : vector<1x1x32xf32> to vector<1x32xf32>
    %355 = vector.broadcast %354 : vector<1x32xf32> to vector<16x32xf32>
    %356 = arith.addf %352, %355 : vector<16x32xf32>
    %c1_172 = arith.constant 1 : index
    %c0_173 = arith.constant 0 : index
    %c0_174 = arith.constant 0 : index
    %357 = vector.load %arg8[%c1_172, %c0_173, %c0_174] : memref<2x32x16xf32, #tpu.memory_space<vmem>>, vector<1x32x16xf32>
    %358 = vector.shape_cast %357 : vector<1x32x16xf32> to vector<32x16xf32>
    %cst_175 = arith.constant dense<0.000000e+00> : vector<16x16xf32>
    %359 = tpu.matmul %356, %358, %cst_175 {dimension_numbers = #tpu.dot_dimension_numbers<[1], [0], [0], [1], [0, 0, 1, 1], [], []>} : vector<16x32xf32>, vector<32x16xf32>, vector<16x16xf32> -> vector<16x16xf32>
    %c1_176 = arith.constant 1 : index
    %c0_177 = arith.constant 0 : index
    %c0_178 = arith.constant 0 : index
    %360 = vector.load %arg9[%c1_176, %c0_177, %c0_178] : memref<2x1x16xf32, #tpu.memory_space<vmem>>, vector<1x1x16xf32>
    %361 = vector.shape_cast %360 : vector<1x1x16xf32> to vector<1x16xf32>
    %362 = vector.broadcast %361 : vector<1x16xf32> to vector<16x16xf32>
    %363 = arith.addf %359, %362 : vector<16x16xf32>
    %cst_179 = arith.constant 5.000000e-01 : f32
    %364 = vector.broadcast %cst_179 : f32 to vector<16x16xf32>
    %365 = arith.mulf %364, %363 : vector<16x16xf32>
    %cst_180 = arith.constant 4.471500e-02 : f32
    %366 = vector.broadcast %cst_180 : f32 to vector<16x16xf32>
    %367 = arith.mulf %366, %363 : vector<16x16xf32>
    %368 = arith.mulf %367, %363 : vector<16x16xf32>
    %369 = arith.mulf %368, %363 : vector<16x16xf32>
    %370 = arith.addf %363, %369 : vector<16x16xf32>
    %cst_181 = arith.constant 0.797884583 : f32
    %371 = vector.broadcast %cst_181 : f32 to vector<16x16xf32>
    %372 = arith.mulf %371, %370 : vector<16x16xf32>
    %373 = math.tanh %372 : vector<16x16xf32>
    %cst_182 = arith.constant 1.000000e+00 : f32
    %374 = vector.broadcast %cst_182 : f32 to vector<16x16xf32>
    %375 = arith.addf %374, %373 : vector<16x16xf32>
    %376 = arith.mulf %365, %375 : vector<16x16xf32>
    %c1_183 = arith.constant 1 : index
    %c0_184 = arith.constant 0 : index
    %c0_185 = arith.constant 0 : index
    %377 = vector.load %arg10[%c1_183, %c0_184, %c0_185] : memref<2x16x32xf32, #tpu.memory_space<vmem>>, vector<1x16x32xf32>
    %378 = vector.shape_cast %377 : vector<1x16x32xf32> to vector<16x32xf32>
    %cst_186 = arith.constant dense<0.000000e+00> : vector<16x32xf32>
    %379 = tpu.matmul %376, %378, %cst_186 {dimension_numbers = #tpu.dot_dimension_numbers<[1], [0], [0], [1], [0, 0, 1, 1], [], []>} : vector<16x16xf32>, vector<16x32xf32>, vector<16x32xf32> -> vector<16x32xf32>
    %380 = arith.addf %356, %379 : vector<16x32xf32>
    %c1_187 = arith.constant 1 : index
    %c0_188 = arith.constant 0 : index
    %c0_189 = arith.constant 0 : index
    %381 = vector.load %arg11[%c1_187, %c0_188, %c0_189] : memref<2x1x32xf32, #tpu.memory_space<vmem>>, vector<1x1x32xf32>
    %382 = vector.shape_cast %381 : vector<1x1x32xf32> to vector<1x32xf32>
    %383 = vector.broadcast %382 : vector<1x32xf32> to vector<16x32xf32>
    %384 = arith.addf %380, %383 : vector<16x32xf32>
    %385 = arith.addf %384, %259 : vector<16x32xf32>
    %c1_190 = arith.constant 1 : index
    %c0_191 = arith.constant 0 : index
    %c0_192 = arith.constant 0 : index
    %386 = vector.load %arg12[%c1_190, %c0_191, %c0_192] : memref<2x1x32xf32, #tpu.memory_space<vmem>>, vector<1x1x32xf32>
    %387 = vector.shape_cast %386 : vector<1x1x32xf32> to vector<1x32xf32>
    %c1_193 = arith.constant 1 : index
    %c0_194 = arith.constant 0 : index
    %c0_195 = arith.constant 0 : index
    %388 = vector.load %arg13[%c1_193, %c0_194, %c0_195] : memref<2x1x32xf32, #tpu.memory_space<vmem>>, vector<1x1x32xf32>
    %389 = vector.shape_cast %388 : vector<1x1x32xf32> to vector<1x32xf32>
    %cst_196 = arith.constant dense<0.000000e+00> : vector<16xf32>
    %390 = vector.multi_reduction <add>, %385, %cst_196 [1] : vector<16x32xf32> to vector<16xf32>
    %391 = vector.shape_cast %390 : vector<16xf32> to vector<16x1xf32>
    %cst_197 = arith.constant 3.200000e+01 : f32
    %392 = vector.broadcast %cst_197 : f32 to vector<16x1xf32>
    %393 = arith.divf %391, %392 : vector<16x1xf32>
    %394 = vector.broadcast %393 : vector<16x1xf32> to vector<16x32xf32>
    %395 = arith.subf %385, %394 : vector<16x32xf32>
    %396 = arith.mulf %395, %395 : vector<16x32xf32>
    %cst_198 = arith.constant dense<0.000000e+00> : vector<16xf32>
    %397 = vector.multi_reduction <add>, %396, %cst_198 [1] : vector<16x32xf32> to vector<16xf32>
    %398 = vector.shape_cast %397 : vector<16xf32> to vector<16x1xf32>
    %cst_199 = arith.constant 3.200000e+01 : f32
    %399 = vector.broadcast %cst_199 : f32 to vector<16x1xf32>
    %400 = arith.divf %398, %399 : vector<16x1xf32>
    %401 = vector.broadcast %393 : vector<16x1xf32> to vector<16x32xf32>
    %402 = arith.subf %385, %401 : vector<16x32xf32>
    %cst_200 = arith.constant 9.99999996E-13 : f32
    %403 = vector.broadcast %cst_200 : f32 to vector<16x1xf32>
    %404 = arith.addf %400, %403 : vector<16x1xf32>
    %405 = math.rsqrt %404 : vector<16x1xf32>
    %406 = vector.broadcast %405 : vector<16x1xf32> to vector<16x32xf32>
    %407 = arith.mulf %402, %406 : vector<16x32xf32>
    %408 = vector.broadcast %387 : vector<1x32xf32> to vector<16x32xf32>
    %409 = arith.mulf %407, %408 : vector<16x32xf32>
    %410 = vector.broadcast %389 : vector<1x32xf32> to vector<16x32xf32>
    %411 = arith.addf %409, %410 : vector<16x32xf32>
    %c1_201 = arith.constant 1 : index
    %c0_202 = arith.constant 0 : index
    %c0_203 = arith.constant 0 : index
    %412 = vector.load %arg14[%c1_201, %c0_202, %c0_203] : memref<2x32x64xf32, #tpu.memory_space<vmem>>, vector<1x32x64xf32>
    %413 = vector.shape_cast %412 : vector<1x32x64xf32> to vector<32x64xf32>
    %cst_204 = arith.constant dense<0.000000e+00> : vector<16x64xf32>
    %414 = tpu.matmul %411, %413, %cst_204 {dimension_numbers = #tpu.dot_dimension_numbers<[1], [0], [0], [1], [0, 0, 1, 1], [], []>} : vector<16x32xf32>, vector<32x64xf32>, vector<16x64xf32> -> vector<16x64xf32>
    %c1_205 = arith.constant 1 : index
    %c0_206 = arith.constant 0 : index
    %c0_207 = arith.constant 0 : index
    %415 = vector.load %arg15[%c1_205, %c0_206, %c0_207] : memref<2x1x64xf32, #tpu.memory_space<vmem>>, vector<1x1x64xf32>
    %416 = vector.shape_cast %415 : vector<1x1x64xf32> to vector<1x64xf32>
    %417 = vector.broadcast %416 : vector<1x64xf32> to vector<16x64xf32>
    %418 = arith.addf %414, %417 : vector<16x64xf32>
    %cst_208 = arith.constant 5.000000e-01 : f32
    %419 = vector.broadcast %cst_208 : f32 to vector<16x64xf32>
    %420 = arith.mulf %419, %418 : vector<16x64xf32>
    %cst_209 = arith.constant 4.471500e-02 : f32
    %421 = vector.broadcast %cst_209 : f32 to vector<16x64xf32>
    %422 = arith.mulf %421, %418 : vector<16x64xf32>
    %423 = arith.mulf %422, %418 : vector<16x64xf32>
    %424 = arith.mulf %423, %418 : vector<16x64xf32>
    %425 = arith.addf %418, %424 : vector<16x64xf32>
    %cst_210 = arith.constant 0.797884583 : f32
    %426 = vector.broadcast %cst_210 : f32 to vector<16x64xf32>
    %427 = arith.mulf %426, %425 : vector<16x64xf32>
    %428 = math.tanh %427 : vector<16x64xf32>
    %cst_211 = arith.constant 1.000000e+00 : f32
    %429 = vector.broadcast %cst_211 : f32 to vector<16x64xf32>
    %430 = arith.addf %429, %428 : vector<16x64xf32>
    %431 = arith.mulf %420, %430 : vector<16x64xf32>
    %c1_212 = arith.constant 1 : index
    %c0_213 = arith.constant 0 : index
    %c0_214 = arith.constant 0 : index
    %432 = vector.load %arg16[%c1_212, %c0_213, %c0_214] : memref<2x64x32xf32, #tpu.memory_space<vmem>>, vector<1x64x32xf32>
    %433 = vector.shape_cast %432 : vector<1x64x32xf32> to vector<64x32xf32>
    %cst_215 = arith.constant dense<0.000000e+00> : vector<16x32xf32>
    %434 = tpu.matmul %431, %433, %cst_215 {dimension_numbers = #tpu.dot_dimension_numbers<[1], [0], [0], [1], [0, 0, 1, 1], [], []>} : vector<16x64xf32>, vector<64x32xf32>, vector<16x32xf32> -> vector<16x32xf32>
    %c1_216 = arith.constant 1 : index
    %c0_217 = arith.constant 0 : index
    %c0_218 = arith.constant 0 : index
    %435 = vector.load %arg17[%c1_216, %c0_217, %c0_218] : memref<2x1x32xf32, #tpu.memory_space<vmem>>, vector<1x1x32xf32>
    %436 = vector.shape_cast %435 : vector<1x1x32xf32> to vector<1x32xf32>
    %437 = vector.broadcast %436 : vector<1x32xf32> to vector<16x32xf32>
    %438 = arith.addf %434, %437 : vector<16x32xf32>
    %c1_219 = arith.constant 1 : index
    %c0_220 = arith.constant 0 : index
    %c0_221 = arith.constant 0 : index
    %439 = vector.load %arg18[%c1_219, %c0_220, %c0_221] : memref<2x32x16xf32, #tpu.memory_space<vmem>>, vector<1x32x16xf32>
    %440 = vector.shape_cast %439 : vector<1x32x16xf32> to vector<32x16xf32>
    %cst_222 = arith.constant dense<0.000000e+00> : vector<16x16xf32>
    %441 = tpu.matmul %438, %440, %cst_222 {dimension_numbers = #tpu.dot_dimension_numbers<[1], [0], [0], [1], [0, 0, 1, 1], [], []>} : vector<16x32xf32>, vector<32x16xf32>, vector<16x16xf32> -> vector<16x16xf32>
    %c1_223 = arith.constant 1 : index
    %c0_224 = arith.constant 0 : index
    %c0_225 = arith.constant 0 : index
    %442 = vector.load %arg19[%c1_223, %c0_224, %c0_225] : memref<2x1x16xf32, #tpu.memory_space<vmem>>, vector<1x1x16xf32>
    %443 = vector.shape_cast %442 : vector<1x1x16xf32> to vector<1x16xf32>
    %444 = vector.broadcast %443 : vector<1x16xf32> to vector<16x16xf32>
    %445 = arith.addf %441, %444 : vector<16x16xf32>
    %cst_226 = arith.constant 5.000000e-01 : f32
    %446 = vector.broadcast %cst_226 : f32 to vector<16x16xf32>
    %447 = arith.mulf %446, %445 : vector<16x16xf32>
    %cst_227 = arith.constant 4.471500e-02 : f32
    %448 = vector.broadcast %cst_227 : f32 to vector<16x16xf32>
    %449 = arith.mulf %448, %445 : vector<16x16xf32>
    %450 = arith.mulf %449, %445 : vector<16x16xf32>
    %451 = arith.mulf %450, %445 : vector<16x16xf32>
    %452 = arith.addf %445, %451 : vector<16x16xf32>
    %cst_228 = arith.constant 0.797884583 : f32
    %453 = vector.broadcast %cst_228 : f32 to vector<16x16xf32>
    %454 = arith.mulf %453, %452 : vector<16x16xf32>
    %455 = math.tanh %454 : vector<16x16xf32>
    %cst_229 = arith.constant 1.000000e+00 : f32
    %456 = vector.broadcast %cst_229 : f32 to vector<16x16xf32>
    %457 = arith.addf %456, %455 : vector<16x16xf32>
    %458 = arith.mulf %447, %457 : vector<16x16xf32>
    %c1_230 = arith.constant 1 : index
    %c0_231 = arith.constant 0 : index
    %c0_232 = arith.constant 0 : index
    %459 = vector.load %arg20[%c1_230, %c0_231, %c0_232] : memref<2x16x32xf32, #tpu.memory_space<vmem>>, vector<1x16x32xf32>
    %460 = vector.shape_cast %459 : vector<1x16x32xf32> to vector<16x32xf32>
    %cst_233 = arith.constant dense<0.000000e+00> : vector<16x32xf32>
    %461 = tpu.matmul %458, %460, %cst_233 {dimension_numbers = #tpu.dot_dimension_numbers<[1], [0], [0], [1], [0, 0, 1, 1], [], []>} : vector<16x16xf32>, vector<16x32xf32>, vector<16x32xf32> -> vector<16x32xf32>
    %462 = arith.addf %438, %461 : vector<16x32xf32>
    %c1_234 = arith.constant 1 : index
    %c0_235 = arith.constant 0 : index
    %c0_236 = arith.constant 0 : index
    %463 = vector.load %arg21[%c1_234, %c0_235, %c0_236] : memref<2x1x32xf32, #tpu.memory_space<vmem>>, vector<1x1x32xf32>
    %464 = vector.shape_cast %463 : vector<1x1x32xf32> to vector<1x32xf32>
    %465 = vector.broadcast %464 : vector<1x32xf32> to vector<16x32xf32>
    %466 = arith.addf %462, %465 : vector<16x32xf32>
    %467 = arith.addf %466, %411 : vector<16x32xf32>
    %c1_237 = arith.constant 1 : index
    %c0_238 = arith.constant 0 : index
    %c0_239 = arith.constant 0 : index
    %468 = vector.load %arg22[%c1_237, %c0_238, %c0_239] : memref<2x1x32xf32, #tpu.memory_space<vmem>>, vector<1x1x32xf32>
    %469 = vector.shape_cast %468 : vector<1x1x32xf32> to vector<1x32xf32>
    %c1_240 = arith.constant 1 : index
    %c0_241 = arith.constant 0 : index
    %c0_242 = arith.constant 0 : index
    %470 = vector.load %arg23[%c1_240, %c0_241, %c0_242] : memref<2x1x32xf32, #tpu.memory_space<vmem>>, vector<1x1x32xf32>
    %471 = vector.shape_cast %470 : vector<1x1x32xf32> to vector<1x32xf32>
    %cst_243 = arith.constant dense<0.000000e+00> : vector<16xf32>
    %472 = vector.multi_reduction <add>, %467, %cst_243 [1] : vector<16x32xf32> to vector<16xf32>
    %473 = vector.shape_cast %472 : vector<16xf32> to vector<16x1xf32>
    %cst_244 = arith.constant 3.200000e+01 : f32
    %474 = vector.broadcast %cst_244 : f32 to vector<16x1xf32>
    %475 = arith.divf %473, %474 : vector<16x1xf32>
    %476 = vector.broadcast %475 : vector<16x1xf32> to vector<16x32xf32>
    %477 = arith.subf %467, %476 : vector<16x32xf32>
    %478 = arith.mulf %477, %477 : vector<16x32xf32>
    %cst_245 = arith.constant dense<0.000000e+00> : vector<16xf32>
    %479 = vector.multi_reduction <add>, %478, %cst_245 [1] : vector<16x32xf32> to vector<16xf32>
    %480 = vector.shape_cast %479 : vector<16xf32> to vector<16x1xf32>
    %cst_246 = arith.constant 3.200000e+01 : f32
    %481 = vector.broadcast %cst_246 : f32 to vector<16x1xf32>
    %482 = arith.divf %480, %481 : vector<16x1xf32>
    %483 = vector.broadcast %475 : vector<16x1xf32> to vector<16x32xf32>
    %484 = arith.subf %467, %483 : vector<16x32xf32>
    %cst_247 = arith.constant 9.99999996E-13 : f32
    %485 = vector.broadcast %cst_247 : f32 to vector<16x1xf32>
    %486 = arith.addf %482, %485 : vector<16x1xf32>
    %487 = math.rsqrt %486 : vector<16x1xf32>
    %488 = vector.broadcast %487 : vector<16x1xf32> to vector<16x32xf32>
    %489 = arith.mulf %484, %488 : vector<16x32xf32>
    %490 = vector.broadcast %469 : vector<1x32xf32> to vector<16x32xf32>
    %491 = arith.mulf %489, %490 : vector<16x32xf32>
    %492 = vector.broadcast %471 : vector<1x32xf32> to vector<16x32xf32>
    %493 = arith.addf %491, %492 : vector<16x32xf32>
    %494 = vector.extract_strided_slice %493 {offsets = [0, 0], sizes = [1, 32], strides = [1, 1]} : vector<16x32xf32> to vector<1x32xf32>
    %c0_248 = arith.constant 0 : index
    %c0_249 = arith.constant 0 : index
    %495 = vector.load %arg24[%c0_248, %c0_249] : memref<32x32xf32, #tpu.memory_space<vmem>>, vector<32x32xf32>
    %cst_250 = arith.constant dense<0.000000e+00> : vector<1x32xf32>
    %496 = tpu.matmul %494, %495, %cst_250 {dimension_numbers = #tpu.dot_dimension_numbers<[1], [0], [0], [1], [0, 0, 1, 1], [], []>} : vector<1x32xf32>, vector<32x32xf32>, vector<1x32xf32> -> vector<1x32xf32>
    %c0_251 = arith.constant 0 : index
    %c0_252 = arith.constant 0 : index
    %497 = vector.load %arg25[%c0_251, %c0_252] : memref<1x32xf32, #tpu.memory_space<vmem>>, vector<1x32xf32>
    %498 = arith.addf %496, %497 : vector<1x32xf32>
    %499 = math.tanh %498 : vector<1x32xf32>
    %c0_253 = arith.constant 0 : index
    %c0_254 = arith.constant 0 : index
    %500 = vector.load %arg26[%c0_253, %c0_254] : memref<32x8xf32, #tpu.memory_space<vmem>>, vector<32x8xf32>
    %cst_255 = arith.constant dense<0.000000e+00> : vector<1x8xf32>
    %501 = tpu.matmul %499, %500, %cst_255 {dimension_numbers = #tpu.dot_dimension_numbers<[1], [0], [0], [1], [0, 0, 1, 1], [], []>} : vector<1x32xf32>, vector<32x8xf32>, vector<1x8xf32> -> vector<1x8xf32>
    %c0_256 = arith.constant 0 : index
    %c0_257 = arith.constant 0 : index
    %502 = vector.load %arg27[%c0_256, %c0_257] : memref<1x8xf32, #tpu.memory_space<vmem>>, vector<1x8xf32>
    %503 = arith.addf %501, %502 : vector<1x8xf32>
    %c0_258 = arith.constant 0 : index
    %c0_259 = arith.constant 0 : index
    %504 = vector.load %arg28[%c0_258, %c0_259] : memref<2x8xf32, #tpu.memory_space<vmem>>, vector<1x8xf32>
    tpu.vector_store %arg28[%c0_258, %c0_259], %503 {strides = array<i32>} : memref<2x8xf32, #tpu.memory_space<vmem>>, vector<1x8xf32>,
    %505 = arith.mulf %499, %499 : vector<1x32xf32>
    %cst_260 = arith.constant dense<0.000000e+00> : vector<1xf32>
    %506 = vector.multi_reduction <add>, %505, %cst_260 [1] : vector<1x32xf32> to vector<1xf32>
    %507 = vector.shape_cast %506 : vector<1xf32> to vector<1x1xf32>
    %508 = math.sqrt %507 : vector<1x1xf32>
    %cst_261 = arith.constant 9.99999996E-13 : f32
    %509 = vector.broadcast %cst_261 : f32 to vector<1x1xf32>
    %510 = arith.maximumf %508, %509 : vector<1x1xf32>
    %511 = vector.broadcast %510 : vector<1x1xf32> to vector<1x32xf32>
    %512 = arith.divf %499, %511 : vector<1x32xf32>
    %c0_262 = arith.constant 0 : index
    %c0_263 = arith.constant 0 : index
    %513 = vector.load %arg29[%c0_262, %c0_263] : memref<2x32xf32, #tpu.memory_space<vmem>>, vector<1x32xf32>
    tpu.vector_store %arg29[%c0_262, %c0_263], %512 {strides = array<i32>} : memref<2x32xf32, #tpu.memory_space<vmem>>, vector<1x32xf32>,
    %514 = vector.extract_strided_slice %493 {offsets = [8, 0], sizes = [1, 32], strides = [1, 1]} : vector<16x32xf32> to vector<1x32xf32>
    %c0_264 = arith.constant 0 : index
    %c0_265 = arith.constant 0 : index
    %515 = vector.load %arg24[%c0_264, %c0_265] : memref<32x32xf32, #tpu.memory_space<vmem>>, vector<32x32xf32>
    %cst_266 = arith.constant dense<0.000000e+00> : vector<1x32xf32>
    %516 = tpu.matmul %514, %515, %cst_266 {dimension_numbers = #tpu.dot_dimension_numbers<[1], [0], [0], [1], [0, 0, 1, 1], [], []>} : vector<1x32xf32>, vector<32x32xf32>, vector<1x32xf32> -> vector<1x32xf32>
    %c0_267 = arith.constant 0 : index
    %c0_268 = arith.constant 0 : index
    %517 = vector.load %arg25[%c0_267, %c0_268] : memref<1x32xf32, #tpu.memory_space<vmem>>, vector<1x32xf32>
    %518 = arith.addf %516, %517 : vector<1x32xf32>
    %519 = math.tanh %518 : vector<1x32xf32>
    %c0_269 = arith.constant 0 : index
    %c0_270 = arith.constant 0 : index
    %520 = vector.load %arg26[%c0_269, %c0_270] : memref<32x8xf32, #tpu.memory_space<vmem>>, vector<32x8xf32>
    %cst_271 = arith.constant dense<0.000000e+00> : vector<1x8xf32>
    %521 = tpu.matmul %519, %520, %cst_271 {dimension_numbers = #tpu.dot_dimension_numbers<[1], [0], [0], [1], [0, 0, 1, 1], [], []>} : vector<1x32xf32>, vector<32x8xf32>, vector<1x8xf32> -> vector<1x8xf32>
    %c0_272 = arith.constant 0 : index
    %c0_273 = arith.constant 0 : index
    %522 = vector.load %arg27[%c0_272, %c0_273] : memref<1x8xf32, #tpu.memory_space<vmem>>, vector<1x8xf32>
    %523 = arith.addf %521, %522 : vector<1x8xf32>
    %c1_274 = arith.constant 1 : index
    %c0_275 = arith.constant 0 : index
    %524 = vector.load %arg28[%c1_274, %c0_275] : memref<2x8xf32, #tpu.memory_space<vmem>>, vector<1x8xf32>
    tpu.vector_store %arg28[%c1_274, %c0_275], %523 {strides = array<i32>} : memref<2x8xf32, #tpu.memory_space<vmem>>, vector<1x8xf32>,
    %525 = arith.mulf %519, %519 : vector<1x32xf32>
    %cst_276 = arith.constant dense<0.000000e+00> : vector<1xf32>
    %526 = vector.multi_reduction <add>, %525, %cst_276 [1] : vector<1x32xf32> to vector<1xf32>
    %527 = vector.shape_cast %526 : vector<1xf32> to vector<1x1xf32>
    %528 = math.sqrt %527 : vector<1x1xf32>
    %cst_277 = arith.constant 9.99999996E-13 : f32
    %529 = vector.broadcast %cst_277 : f32 to vector<1x1xf32>
    %530 = arith.maximumf %528, %529 : vector<1x1xf32>
    %531 = vector.broadcast %530 : vector<1x1xf32> to vector<1x32xf32>
    %532 = arith.divf %519, %531 : vector<1x32xf32>
    %c1_278 = arith.constant 1 : index
    %c0_279 = arith.constant 0 : index
    %533 = vector.load %arg29[%c1_278, %c0_279] : memref<2x32xf32, #tpu.memory_space<vmem>>, vector<1x32xf32>
    tpu.vector_store %arg29[%c1_278, %c0_279], %532 {strides = array<i32>} : memref<2x32xf32, #tpu.memory_space<vmem>>, vector<1x32xf32>,
    return
  }
}

</mosaic_0001>

<bundles_post_ra>
// kernel: net_forward.1
= control target key start
LH: loop header
LB: loop body
LE: loop exit
PB: predicated region body
PF: predicated region fallthrough
CT: control target
= control target key end

     0   :  { %s4464_s6 = smov 1   ;;  %s4465_s10 = smov 2   ;;  %s5045_s0 = inlined_call_operand.smem [shape: u32[30], index: -1, kind: input, shape index: {}] }
   0x1   :  { %s4510_s5 = sld [smem:[%s5045_s0]]   ;;  %s4466_s14 = smov 3  }
   0x2   :  { %s4515_s9 = sld [smem:[%s5045_s0 + %s4464_s6]]   ;;  %s4467_s18 = smov 4  }
   0x3   :  { %s4520_s13 = sld [smem:[%s5045_s0 + %s4465_s10]]   ;;  %s4468_s22 = smov 5  }
   0x4   :  { %s4525_s17 = sld [smem:[%s5045_s0 + %s4466_s14]]   ;;  %s4469_s26 = smov 6  }
   0x5   :  { %s4530_s21 = sld [smem:[%s5045_s0 + %s4467_s18]]   ;;  %s4470_s30 = smov 7  }
   0x6   :  { %s4535_s25 = sld [smem:[%s5045_s0 + %s4468_s22]]   ;;  %s4471_s4 = smov 8  }
   0x7   :  { %s4540_s29 = sld [smem:[%s5045_s0 + %s4469_s26]]   ;;  %s4472_s10 = smov 9  }
   0x8   :  { %s4545_s3 = sld [smem:[%s5045_s0 + %s4470_s30]]   ;;  %s4473_s15 = smov 10  }
   0x9   :  { %s4550_s8 = sld [smem:[%s5045_s0 + %s4471_s4]]   ;;  %s4474_s20 = smov 11  }
   0xa   :  { %s4555_s14 = sld [smem:[%s5045_s0 + %s4472_s10]]   ;;  %s4475_s26 = smov 12  }
   0xb   :  { %s4560_s19 = sld [smem:[%s5045_s0 + %s4473_s15]]   ;;  %s4476_s1 = smov 13  }
   0xc   :  { %s4565_s24 = sld [smem:[%s5045_s0 + %s4474_s20]]   ;;  %s4477_s7 = smov 14  }
   0xd   :  { %s4570_s30 = sld [smem:[%s5045_s0 + %s4475_s26]]   ;;  %s4478_s15 = smov 15  }
   0xe   :  { %s4575_s6 = sld [smem:[%s5045_s0 + %s4476_s1]]   ;;  %s4479_s22 = smov 16  }
   0xf   :  { %s4580_s12 = sld [smem:[%s5045_s0 + %s4477_s7]]   ;;  %s4480_s28 = smov 17  }
  0x10   :  { %s4585_s20 = sld [smem:[%s5045_s0 + %s4478_s15]]   ;;  %s4481_s7 = smov 18  }
  0x11   :  { %s4590_s27 = sld [smem:[%s5045_s0 + %s4479_s22]]   ;;  %s4482_s15 = smov 19  }
  0x12   :  { %s4595_s4 = sld [smem:[%s5045_s0 + %s4480_s28]]   ;;  %s4483_s22 = smov 20  }
  0x13   :  { %s4484_s28 = smov 21  }
  0x14   :  { %5058 = sst [smem:[#allocation6_spill]] %s4575_s6 }
  0x15   :  { %s4600_s6 = sld [smem:[%s5045_s0 + %s4481_s7]]   ;;  %s4485_s7 = smov 22  }
  0x16   :  { %5059 = sst [smem:[#allocation7_spill]] %s4585_s20 }
  0x17   :  { %5060 = sst [smem:[#allocation8_spill]] %s4590_s27 }
  0x18   :  { %5061 = sst [smem:[#allocation9_spill]] %s4595_s4 }
  0x19   :  { %s4605_s20 = sld [smem:[%s5045_s0 + %s4482_s15]]   ;;  %s4486_s15 = smov 23  }
  0x1a   :  { %s4610_s27 = sld [smem:[%s5045_s0 + %s4483_s22]]   ;;  %s4487_s22 = smov 24  }
  0x1b   :  { %5062 = sst [smem:[#allocation10_spill]] %s4600_s6 }
  0x1c   :  { %s4615_s4 = sld [smem:[%s5045_s0 + %s4484_s28]]   ;;  %s4488_s28 = smov 25  }
  0x1d   :  { %s4620_s6 = sld [smem:[%s5045_s0 + %s4485_s7]]   ;;  %s4489_s7 = smov 26  }
  0x1f   :  { %5063 = sst [smem:[#allocation11_spill]] %s4605_s20 }
  0x20   :  { %5064 = sst [smem:[#allocation12_spill]] %s4610_s27 }
  0x21   :  { %s4625_s20 = sld [smem:[%s5045_s0 + %s4486_s15]]   ;;  %s4490_s15 = smov 27  }
  0x22   :  { %5065 = sst [smem:[#allocation13_spill]] %s4615_s4 }
  0x23   :  { %5066 = sst [smem:[#allocation14_spill]] %s4620_s6 }
  0x24   :  { %s4630_s27 = sld [smem:[%s5045_s0 + %s4487_s22]]   ;;  %s4491_s22 = smov 28  }
  0x25   :  { %s4635_s4 = sld [smem:[%s5045_s0 + %s4488_s28]]   ;;  %s4492_s28 = smov 29  }
  0x26   :  { %s4640_s6 = sld [smem:[%s5045_s0 + %s4489_s7]]  }
  0x27   :  { %5067 = sst [smem:[#allocation15_spill]] %s4625_s20 }
  0x28   :  { %s4645_s20 = sld [smem:[%s5045_s0 + %s4490_s15]]  }
  0x2a   :  { %5068 = sst [smem:[#allocation16_spill]] %s4630_s27 }
  0x2b   :  { %5069 = sst [smem:[#allocation17_spill]] %s4635_s4 }
  0x2c   :  { %s4650_s27 = sld [smem:[%s5045_s0 + %s4491_s22]]  }
  0x2d   :  { %s4655_s4 = sld [smem:[%s5045_s0 + %s4492_s28]]  }
  0x2e   :  { %v122_v0 = vld [vmem:[%s4510_s5] sm:$0xff]  ;;  %vm126_vm0 = vcmask 261120   ;;  %v123_v1 = vld [vmem:[%s4510_s5 + $0x8] sm:$0xff] }
  0x2f   :  { %65 = vsyncpa [#allocation4], 0  ;;  %v127_v2 = vsel %vm126_vm0, %v122_v0, 0.0  ;;  %v130_v3 = vsel %vm126_vm0, %v123_v1, 0.0  ;;  %v174_v14 = vld [vmem:[%s4530_s21 + $0x18] sm:$0xff]  ;;  %v173_v15 = vld [vmem:[%s4530_s21 + $0x10] sm:$0xff]  ;;  %v342_v46 = vlaneseq }
  0x30   :  { %128 = vadd.xlane.f32.xlu0 %v127_v2  ;;  %4016 = vmatprep.subr.mxu0 %v174_v14  ;;  %v172_v16 = vld [vmem:[%s4530_s21 + $0x8] sm:$0xff]  ;;  %v171_v17 = vld [vmem:[%s4530_s21] sm:$0xff]  ;;  %v4493_v34 = vmov 0.0   ;;  %vm4494_vm1 = vmmov 0   ;;  %s4495_s0 = smov 80   ;;  %s4496_s5 = smov 96  }
  0x31   :  { %4017 = vmatpush3.msra.mxu0 %v174_v14  ;;  %v3738_v25 = vld [vmem:[%s4520_s13] ss:$0 sm:$0xff]  ;;  %4027 = vmatprep.subr.mxu1 %v4493_v34  ;;  %s4497_s13 = smov 112   ;;  %vm266_vm2 = vcmask 130048   ;;  %v343_v47 = vshrl.u32 %v342_v46, 7  ;;  %vm347_vm3 = vcmask 64512  }
  0x32   :  { %4018 = vmatprep.subr.mxu0 %v173_v15  ;;  %v3739_v27 = vld [vmem:[%s4525_s17] ss:$0 sm:$0xff]  ;;  %4029 = vmatprep.mubr.msk.f32.mxu1 %vm4494_vm1, %v4493_v34  ;;  %s4499_s17 = smov 64   ;;  %s4500_s7 = smov 16   ;;  %vm607_vm4 = vcmask 261248   ;;  %vm1421_vm5 = vcmask 523264  }
  0x33   :  { %4019 = vmatpush3.msra.mxu0 %v173_v15  ;;  %v3740_v36 = vld [vmem:[%s4535_s25] ss:$0 sm:$0xff]  ;;  %v344_v48 = vsub.s32 0, %v343_v47  ;;  %v689_v58 = vsub.s32 1, %v343_v47  ;;  %s5070_s10 = sld [smem:[#allocation6_spill]]  ;;  %vm3503_vm6 = vcmask 253952  }
  0x34   :  { %131 = vadd.xlane.f32.xlu0 %v130_v3  ;;  %4020 = vmatprep.subr.mxu0 %v172_v16  ;;  %v170_v49 = vld [vmem:[%s4515_s9] sm:$0x3]  ;;  %s4498_s9 = smov 48   ;;  %s5071_s11 = sld [smem:[#allocation8_spill]] }
  0x35   :  { %4021 = vmatpush3.msra.mxu0 %v172_v16  ;;  %v4720_v50 = vrot.slane %v170_v49, %v344_v48  ;;  %v4726_v62 = vrot.slane %v170_v49, %v689_v58  ;;  %v954_v58 = vld [vmem:[%s4540_s29] sm:$0xff]  ;;  %s5072_s15 = sld [smem:[#allocation10_spill]] }
  0x36   :  { %4022 = vmatprep.subr.mxu0 %v171_v17  ;;  %s5073_s16 = sld [smem:[#allocation7_spill]] }
  0x37   :  { %4023 = vmatpush3.msra.mxu0 %v171_v17  ;;  %s5074_s18 = sld [smem:[#allocation9_spill]] }
  0x38   :  { %4037 = vmatprep.subr.mxu0 %v4493_v34  ;;  %s5075_s22 = sld [smem:[#allocation12_spill]] }
  0x39   :  { %s5076_s23 = sld [smem:[#allocation11_spill]] }
  0x3a   :  { %s5077_s26 = sld [smem:[#allocation13_spill]] }
  0x3b   :  { %s5078_s28 = sld [smem:[#allocation14_spill]] }
  0x3c   :  { %s5079_s1 = sld [smem:[#allocation15_spill]] }
  0xb9   :  { %v129_v4 = vpop.xlane.xlu0 %128 }
  0xba   :  { %v134_v5 = vmul.f32 0.03125, %v129_v4 }
  0xbc   :  { %v136_v6 = vsub.f32 %v122_v0, %v134_v5 }
  0xbd   :  { %v132_v7 = vpop.xlane.xlu0 %131 }
  0xbe   :  { %v135_v8 = vmul.f32 0.03125, %v132_v7  ;;  %v138_v9 = vmul.f32 %v136_v6, %v136_v6 }
  0xc0   :  { %v137_v10 = vsub.f32 %v123_v1, %v135_v8  ;;  %v140_v11 = vsel %vm126_vm0, %v138_v9, 0.0 }
  0xc1   :  { %141 = vadd.xlane.f32.xlu1 %v140_v11 }
  0xc2   :  { %v139_v12 = vmul.f32 %v137_v10, %v137_v10 }
  0xc4   :  { %v143_v13 = vsel %vm126_vm0, %v139_v12, 0.0 }
  0xc5   :  { %144 = vadd.xlane.f32.xlu1 %v143_v13 }
 0x14a   :  { %v142_v18 = vpop.xlane.xlu1 %141 }
 0x14b   :  { %v146_v19 = vmul.f32 0.03125, %v142_v18 }
 0x14d   :  { %v148_v20 = vadd.f32 1e-12, %v146_v19 }
 0x14e   :  { %v145_v21 = vpop.xlane.xlu1 %144 }
 0x14f   :  { %4354 = vrsqrt.f32 %v148_v20  ;;  %v147_v22 = vmul.f32 0.03125, %v145_v21 }
 0x151   :  { %v149_v23 = vadd.f32 1e-12, %v147_v22 }
 0x153   :  { %4356 = vrsqrt.f32 %v149_v23 }
 0x15c   :  { %v4355_v24 = vpop.eup %4354 }
 0x15d   :  { %v152_v26 = vmul.f32 %v4355_v24, %v136_v6 }
 0x15f   :  { %v160_v28 = vmul.f32 %v3738_v25, %v152_v26 }
 0x160   :  { %v4357_v29 = vpop.eup %4356 }
 0x161   :  { %v153_v30 = vmul.f32 %v4357_v29, %v137_v10  ;;  %v4669_v31 = vadd.f32 %v3739_v27, %v160_v28 }
 0x163   :  { %v161_v32 = vmul.f32 %v3738_v25, %v153_v30  ;;  %4024 = vmatprep.mubr.msk.f32.mxu0 %vm126_vm0, %v4669_v31 }
 0x165   :  { %v4673_v33 = vadd.f32 %v3739_v27, %v161_v32 }
 0x167   :  { %4025 = vmatmul.mubr.msk.f32.vlgmr.msra.gmra.mxu0 %vm126_vm0, %v4673_v33 }
 0x168   :  { %4039 = vmatprep.mubr.msk.f32.mxu0 %vm4494_vm1, %v4493_v34 }
 0x227   :  { %v4026_v35 = vpop.f32.mrf.mxu0 }
 0x228   :  { %v4690_v39 = vadd.f32 %v4026_v35, %v3740_v36 }
 0x229   :  { %v254_v37 = vpop.f32.mrf.mxu0 }
 0x22a   :  { %v4684_v38 = vadd.f32 %v3740_v36, %v254_v37 }
 0x22c   :  { %438 = vrot.lane.b32.xlu1 %v4684_v38, %s4495_s0  ;;  %264 = vrot.lane.b32.xlu0 %v4684_v38, %s4496_s5 }
 0x230   :  { %436 = vrot.lane.b32.xlu1 %v4684_v38, %s4497_s13  ;;  %782 = vrot.lane.b32.xlu0 %v4690_v39, %s4495_s0 }
 0x234   :  { %610 = vrot.lane.b32.xlu1 %v4690_v39, %s4496_s5 }
 0x238   :  { %780 = vrot.lane.b32.xlu1 %v4690_v39, %s4497_s13 }
 0x29e   :  { %v439_v40 = vpop.permute.xlu1 %438  ;;  %v265_v41 = vpop.permute.xlu0 %264 }
 0x29f   :  { %4028 = vmatpush3.xpose.msk.msra.mxu1 %vm266_vm2, %v265_v41  ;;  %4038 = vmatpush3.xpose.msk.msra.mxu0 %vm266_vm2, %v439_v40 }
 0x2a0   :  { %4047 = vmatprep.subr.mxu0 %v4493_v34  ;;  %4032 = vmatprep.subr.mxu1 %v4493_v34 }
 0x2a2   :  { %v437_v42 = vpop.permute.xlu1 %436  ;;  %4030 = vmatmul.mubr.msk.f32.vlgmr.msra.gmra.mxu1 %vm266_vm2, %v4684_v38  ;;  %v783_v44 = vpop.permute.xlu0 %782 }
 0x2a3   :  { %4040 = vmatmul.mubr.msk.f32.vlgmr.msra.gmra.mxu0 %vm266_vm2, %v437_v42  ;;  %4034 = vmatprep.mubr.msk.f32.mxu1 %vm4494_vm1, %v4493_v34 }
 0x2a4   :  { %4049 = vmatprep.mubr.msk.f32.mxu0 %vm4494_vm1, %v4493_v34 }
 0x2a6   :  { %v611_v43 = vpop.permute.xlu1 %610 }
 0x2a7   :  { %4048 = vmatpush3.xpose.msk.msra.mxu0 %vm266_vm2, %v611_v43 }
 0x2a8   :  { %4057 = vmatprep.subr.mxu0 %v4493_v34 }
 0x2aa   :  { %4050 = vmatmul.mubr.msk.f32.vlgmr.msra.gmra.mxu0 %vm266_vm2, %v4690_v39  ;;  %v781_v45 = vpop.permute.xlu1 %780 }
 0x2ab   :  { %4058 = vmatpush3.xpose.msk.msra.mxu0 %vm266_vm2, %v783_v44  ;;  %4059 = vmatprep.mubr.msk.f32.mxu0 %vm4494_vm1, %v4493_v34 }
 0x2ae   :  { %4060 = vmatmul.mubr.msk.f32.vlgmr.msra.gmra.mxu0 %vm266_vm2, %v781_v45 }
 0x362   :  { %v337_v51 = vpop.f32.mrf.mxu1 }
 0x363   :  { %v341_v52 = vmul.f32 0.25, %v337_v51  ;;  %v510_v53 = vpop.f32.mrf.mxu0 }
 0x364   :  { %v514_v54 = vmul.f32 0.25, %v510_v53  ;;  %v4031_v55 = vpop.f32.mrf.mxu1 }
 0x365   :  { %v4041_v56 = vpop.f32.mrf.mxu0  ;;  %v346_v57 = vadd.f32 %v4720_v50, %v341_v52  ;;  %v957_v55 = vld [vmem:[%s4540_s29 + $0x18] sm:$0xff] }
 0x366   :  { %v515_v59 = vadd.f32 %v514_v54, %v4720_v50  ;;  %v956_v56 = vld [vmem:[%s4540_s29 + $0x10] sm:$0xff]  ;;  %4067 = vmatprep.subr.mxu0 %v957_v55 }
 0x367   :  { %v348_v60 = vsel %vm347_vm3, %v346_v57, -inf  ;;  %4068 = vmatpush3.msra.mxu0 %v957_v55 }
 0x368   :  { %349 = vmax.xlane.f32.xlu0 %v348_v60  ;;  %v516_v61 = vsel %vm347_vm3, %v515_v59, -inf  ;;  %4069 = vmatprep.subr.mxu0 %v956_v56 }
 0x369   :  { %517 = vmax.xlane.f32.xlu1 %v516_v61  ;;  %4070 = vmatpush3.msra.mxu0 %v956_v56 }
 0x36a   :  { %v682_v63 = vpop.f32.mrf.mxu0 }
 0x36b   :  { %v686_v0 = vmul.f32 0.25, %v682_v63 }
 0x36c   :  { %v4051_v1 = vpop.f32.mrf.mxu0 }
 0x36d   :  { %v691_v2 = vadd.f32 %v4726_v62, %v686_v0 }
 0x36e   :  { %v854_v3 = vpop.f32.mrf.mxu0 }
 0x36f   :  { %v858_v4 = vmul.f32 0.25, %v854_v3  ;;  %v692_v5 = vsel %vm347_vm3, %v691_v2, -inf  ;;  %v1048_v3 = vld [vmem:[%s4550_s8 + $0x10] sm:$0xff] }
 0x370   :  { %693 = vmax.xlane.f32.xlu0 %v692_v5  ;;  %v4061_v6 = vpop.f32.mrf.mxu0  ;;  %v1046_v5 = vld [vmem:[%s4550_s8] sm:$0xff] }
 0x371   :  { %v859_v7 = vadd.f32 %v858_v4, %v4726_v62  ;;  %v1047_v4 = vld [vmem:[%s4550_s8 + $0x8] sm:$0xff] }
 0x373   :  { %v860_v8 = vsel %vm347_vm3, %v859_v7, -inf }
 0x374   :  { %861 = vmax.xlane.f32.xlu0 %v860_v8 }
 0x3f1   :  { %v350_v9 = vpop.xlane.xlu0 %349 }
 0x3f2   :  { %v351_v10 = vsub.f32 %v346_v57, %v350_v9  ;;  %v518_v11 = vpop.xlane.xlu1 %517  ;;  %v955_v57 = vld [vmem:[%s4540_s29 + $0x8] sm:$0xff] }
 0x3f3   :  { %v519_v12 = vsub.f32 %v515_v59, %v518_v11  ;;  %4071 = vmatprep.subr.mxu0 %v955_v57  ;;  %v1049_v59 = vld [vmem:[%s4550_s8 + $0x18] sm:$0xff]  ;;  %v1157_v11 = vld [vmem:[%s4560_s19 + $0x8] sm:$0xff] }
 0x3f4   :  { %v352_v13 = vmul.f32 1.442695, %v351_v10  ;;  %4072 = vmatpush3.msra.mxu0 %v955_v57 }
 0x3f5   :  { %v520_v14 = vmul.f32 1.442695, %v519_v12  ;;  %4073 = vmatprep.subr.mxu0 %v954_v58  ;;  %v1156_v12 = vld [vmem:[%s4560_s19] sm:$0xff] }
 0x3f6   :  { %4358 = vpow2.f32 %v352_v13  ;;  %4074 = vmatpush3.msra.mxu0 %v954_v58  ;;  %v3758_v13 = vld [vmem:[%s4555_s14] ss:$0 sm:$0xff] }
 0x3f7   :  { %4360 = vpow2.f32 %v520_v14  ;;  %4089 = vmatprep.subr.mxu0 %v1157_v11 }
 0x3f9   :  { %v694_v15 = vpop.xlane.xlu0 %693 }
 0x3fa   :  { %v695_v16 = vsub.f32 %v691_v2, %v694_v15 }
 0x3fc   :  { %v696_v17 = vmul.f32 1.442695, %v695_v16 }
 0x3fd   :  { %v862_v24 = vpop.xlane.xlu0 %861 }
 0x3fe   :  { %4362 = vpow2.f32 %v696_v17  ;;  %v863_v25 = vsub.f32 %v859_v7, %v862_v24  ;;  %v3755_v7 = vld [vmem:[%s4545_s3] ss:$0 sm:$0xff] }
 0x400   :  { %v864_v26 = vmul.f32 1.442695, %v863_v25 }
 0x402   :  { %4364 = vpow2.f32 %v864_v26 }
 0x403   :  { %v4359_v18 = vpop.eup %4358 }
 0x404   :  { %v4361_v19 = vpop.eup %4360  ;;  %v354_v20 = vsel %vm347_vm3, %v4359_v18, 0.0 }
 0x405   :  { %355 = vadd.xlane.f32.xlu0 %v354_v20  ;;  %v522_v21 = vsel %vm347_vm3, %v4361_v19, 0.0 }
 0x406   :  { %523 = vadd.xlane.f32.xlu1 %v522_v21 }
 0x40b   :  { %v4363_v22 = vpop.eup %4362 }
 0x40c   :  { %v698_v23 = vsel %vm347_vm3, %v4363_v22, 0.0 }
 0x40d   :  { %699 = vadd.xlane.f32.xlu0 %v698_v23 }
 0x40f   :  { %v4365_v27 = vpop.eup %4364 }
 0x410   :  { %v866_v28 = vsel %vm347_vm3, %v4365_v27, 0.0 }
 0x417   :  { %527 = vrot.lane.b32.xlu1 %v4684_v38, %s4498_s9 }
 0x41b   :  { %703 = vrot.lane.b32.xlu1 %v4690_v39, %s4499_s17 }
 0x423   :  { %359 = vrot.lane.b32.xlu0 %v4684_v38, %s4499_s17 }
 0x43f   :  { %867 = vadd.xlane.f32.xlu1 %v866_v28 }
 0x450   :  { %871 = vrot.lane.b32.xlu1 %v4690_v39, %s4498_s9 }
 0x48e   :  { %v356_v29 = vpop.xlane.xlu0 %355 }
 0x48f   :  { %4366 = vrcp.f32 %v356_v29  ;;  %v524_v30 = vpop.xlane.xlu1 %523 }
 0x490   :  { %4368 = vrcp.f32 %v524_v30 }
 0x493   :  { %v528_v37 = vpop.permute.xlu1 %527 }
 0x496   :  { %v700_v32 = vpop.xlane.xlu0 %699 }
 0x497   :  { %4370 = vrcp.f32 %v700_v32  ;;  %v704_v41 = vpop.permute.xlu1 %703 }
 0x49a   :  { %v360_v35 = vpop.permute.xlu0 %359 }
 0x49b   :  { %4033 = vmatpush3.msra.mxu1 %v360_v35 }
 0x49c   :  { %v4367_v36 = vpop.eup %4366  ;;  %4042 = vmatprep.subr.mxu1 %v4493_v34 }
 0x49d   :  { %v358_v38 = vmul.f32 %v4367_v36, %v4359_v18  ;;  %v4369_v40 = vpop.eup %4368 }
 0x49e   :  { %v526_v39 = vmul.f32 %v4369_v40, %v4361_v19 }
 0x49f   :  { %4035 = vmatmul.mubr.msk.f32.vlgmr.msra.gmra.mxu1 %vm347_vm3, %v358_v38 }
 0x4a0   :  { %4043 = vmatpush3.msra.mxu1 %v528_v37  ;;  %4044 = vmatprep.mubr.msk.f32.mxu1 %vm4494_vm1, %v4493_v34 }
 0x4a1   :  { %4052 = vmatprep.subr.mxu1 %v4493_v34 }
 0x4a3   :  { %4045 = vmatmul.mubr.msk.f32.vlgmr.msra.gmra.mxu1 %vm347_vm3, %v526_v39  ;;  %v3763_v39 = vld [vmem:[%s4565_s24] ss:$0 sm:$0xff] }
 0x4a4   :  { %v4371_v42 = vpop.eup %4370  ;;  %4053 = vmatpush3.msra.mxu1 %v704_v41  ;;  %4054 = vmatprep.mubr.msk.f32.mxu1 %vm4494_vm1, %v4493_v34 }
 0x4a5   :  { %v702_v43 = vmul.f32 %v4371_v42, %v4363_v22  ;;  %4062 = vmatprep.subr.mxu1 %v4493_v34 }
 0x4a7   :  { %4055 = vmatmul.mubr.msk.f32.vlgmr.msra.gmra.mxu1 %vm347_vm3, %v702_v43 }
 0x4a8   :  { %4064 = vmatprep.mubr.msk.f32.mxu1 %vm4494_vm1, %v4493_v34 }
 0x4c8   :  { %v868_v44 = vpop.xlane.xlu1 %867 }
 0x4c9   :  { %4372 = vrcp.f32 %v868_v44 }
 0x4cc   :  { %v872_v45 = vpop.permute.xlu1 %871 }
 0x4cd   :  { %4063 = vmatpush3.msra.mxu1 %v872_v45 }
 0x4ce   :  { %4078 = vmatprep.subr.mxu1 %v1049_v59 }
 0x4d6   :  { %v4373_v46 = vpop.eup %4372 }
 0x4d7   :  { %v870_v47 = vmul.f32 %v4373_v46, %v4365_v27 }
 0x4d9   :  { %4065 = vmatmul.mubr.msk.f32.vlgmr.msra.gmra.mxu1 %vm347_vm3, %v870_v47 }
 0x4da   :  { %4079 = vmatpush3.msra.mxu1 %v1049_v59  ;;  %v1299_v59 = vld [vmem:[%s4580_s12 + $0x18] sm:$0xff] }
 0x4db   :  { %4080 = vmatprep.subr.mxu1 %v1048_v3 }
 0x4dc   :  { %4081 = vmatpush3.msra.mxu1 %v1048_v3 }
 0x4dd   :  { %4082 = vmatprep.subr.mxu1 %v1047_v4 }
 0x4de   :  { %4083 = vmatpush3.msra.mxu1 %v1047_v4 }
 0x4df   :  { %4084 = vmatprep.subr.mxu1 %v1046_v5 }
 0x4e0   :  { %4085 = vmatpush3.msra.mxu1 %v1046_v5 }
 0x4e1   :  { %4096 = vmatprep.subr.mxu1 %v1299_v59 }
 0x55f   :  { %v431_v48 = vpop.f32.mrf.mxu1 }
 0x560   :  { %435 = vst.msk [vmem:[#allocation2] sm:$0xff] %vm266_vm2, %v431_v48 }
 0x561   :  { %v4036_v49 = vpop.f32.mrf.mxu1 }
 0x563   :  { %v599_v51 = vpop.f32.mrf.mxu1 }
 0x564   :  { %604 = vrot.lane.b32.xlu0 %v599_v51, %s4500_s7 }
 0x565   :  { %v4046_v52 = vpop.f32.mrf.mxu1 }
 0x567   :  { %v775_v53 = vpop.f32.mrf.mxu1 }
 0x568   :  { %779 = vst.msk [vmem:[#allocation2 + $0x8] sm:$0xff] %vm266_vm2, %v775_v53 }
 0x569   :  { %v4056_v54 = vpop.f32.mrf.mxu1 }
 0x599   :  { %v943_v60 = vpop.f32.mrf.mxu1 }
 0x59a   :  { %948 = vrot.lane.b32.xlu1 %v943_v60, %s4500_s7  ;;  %v1298_v60 = vld [vmem:[%s4580_s12 + $0x10] sm:$0xff] }
 0x59b   :  { %v4066_v61 = vpop.f32.mrf.mxu1 }
 0x59c   :  { %v1297_v61 = vld [vmem:[%s4580_s12 + $0x8] sm:$0xff] }
 0x5d6   :  { %v605_v63 = vpop.permute.xlu0 %604 }
 0x5d7   :  { %608 = vst.msk [vmem:[#allocation2] sm:$0xff] %vm607_vm4, %v605_v63  ;;  %v1296_v63 = vld [vmem:[%s4580_s12] sm:$0xff] }
 0x5de   :  { %v952_v0 = vld [vmem:[#allocation2] sm:$0xff] }
 0x5df   :  { %4075 = vmatprep.mubr.msk.f32.mxu0 %vm126_vm0, %v952_v0 }
 0x60c   :  { %v949_v1 = vpop.permute.xlu1 %948 }
 0x60d   :  { %951 = vst.msk [vmem:[#allocation2 + $0x8] sm:$0xff] %vm607_vm4, %v949_v1 }
 0x614   :  { %v953_v2 = vld [vmem:[#allocation2 + $0x8] sm:$0xff] }
 0x615   :  { %4076 = vmatmul.mubr.msk.f32.vlgmr.msra.gmra.mxu0 %vm126_vm0, %v953_v2 }
 0x616   :  { %4090 = vmatpush3.msra.mxu0 %v1157_v11 }
 0x617   :  { %4091 = vmatprep.subr.mxu0 %v1156_v12 }
 0x618   :  { %4092 = vmatpush3.msra.mxu0 %v1156_v12 }
 0x6d5   :  { %v4077_v6 = vpop.f32.mrf.mxu0 }
 0x6d6   :  { %v1043_v10 = vadd.f32 %v4077_v6, %v3755_v7 }
 0x6d7   :  { %v1037_v8 = vpop.f32.mrf.mxu0 }
 0x6d8   :  { %v1038_v9 = vadd.f32 %v3755_v7, %v1037_v8  ;;  %v3764_v7 = vld [vmem:[%s4570_s30] ss:$0 sm:$0xff] }
 0x6da   :  { %4086 = vmatprep.mubr.msk.f32.mxu1 %vm126_vm0, %v1038_v9 }
 0x6db   :  { %4087 = vmatmul.mubr.msk.f32.vlgmr.msra.gmra.mxu1 %vm126_vm0, %v1043_v10 }
 0x6dc   :  { %4097 = vmatpush3.msra.mxu1 %v1299_v59  ;;  %v1613_v59 = vld [vmem:[%s5075_s22] sm:$0xff] }
 0x6dd   :  { %4098 = vmatprep.subr.mxu1 %v1298_v60 }
 0x6de   :  { %4099 = vmatpush3.msra.mxu1 %v1298_v60  ;;  %v3772_v60 = vld [vmem:[%s5076_s23] ss:$0 sm:$0xff] }
 0x6df   :  { %4100 = vmatprep.subr.mxu1 %v1297_v61 }
 0x6e0   :  { %4101 = vmatpush3.msra.mxu1 %v1297_v61 }
 0x6e1   :  { %4102 = vmatprep.subr.mxu1 %v1296_v63 }
 0x6e2   :  { %4103 = vmatpush3.msra.mxu1 %v1296_v63 }
 0x79b   :  { %v4088_v14 = vpop.f32.mrf.mxu1 }
 0x79c   :  { %v1135_v15 = vadd.f32 %v4088_v14, %v3758_v13 }
 0x79d   :  { %v1129_v16 = vpop.f32.mrf.mxu1 }
 0x79e   :  { %v1141_v17 = vmul.f32 0.044715, %v1135_v15  ;;  %v1130_v18 = vadd.f32 %v3758_v13, %v1129_v16  ;;  %v1139_v36 = vmul.f32 0.5, %v1135_v15  ;;  %v1413_v16 = vld [vmem:[%s5071_s11 + $0x38] sm:$0xff] }
 0x79f   :  { %4107 = vmatprep.subr.mxu0 %v1413_v16 }
 0x7a0   :  { %v1143_v19 = vmul.f32 %v1141_v17, %v1135_v15  ;;  %v1140_v20 = vmul.f32 0.044715, %v1130_v18  ;;  %v1138_v32 = vmul.f32 0.5, %v1130_v18  ;;  %v1412_v17 = vld [vmem:[%s5071_s11 + $0x30] sm:$0xff] }
 0x7a2   :  { %v1145_v21 = vmul.f32 %v1143_v19, %v1135_v15  ;;  %v1142_v22 = vmul.f32 %v1140_v20, %v1130_v18  ;;  %v1410_v19 = vld [vmem:[%s5071_s11 + $0x20] sm:$0xff]  ;;  %v1409_v20 = vld [vmem:[%s5071_s11 + $0x18] sm:$0xff] }
 0x7a4   :  { %v1147_v23 = vadd.f32 %v1145_v21, %v1135_v15  ;;  %v1144_v24 = vmul.f32 %v1142_v22, %v1130_v18  ;;  %v1408_v21 = vld [vmem:[%s5071_s11 + $0x10] sm:$0xff]  ;;  %v1407_v22 = vld [vmem:[%s5071_s11 + $0x8] sm:$0xff] }
 0x7a6   :  { %v1149_v25 = vmul.f32 0.7978846, %v1147_v23  ;;  %v1146_v26 = vadd.f32 %v1144_v24, %v1130_v18  ;;  %v1411_v18 = vld [vmem:[%s5071_s11 + $0x28] sm:$0xff]  ;;  %v1406_v23 = vld [vmem:[%s5071_s11] sm:$0xff]  ;;  %v1506_v24 = vld [vmem:[%s5072_s15 + $0x18] sm:$0xff] }
 0x7a7   :  { %4126 = vmatprep.subr.mxu1 %v1506_v24 }
 0x7a8   :  { %4374 = vtanh.f32 %v1149_v25  ;;  %v1148_v27 = vmul.f32 0.7978846, %v1146_v26  ;;  %v3766_v25 = vld [vmem:[%s5073_s16] ss:$0 sm:$0xff] }
 0x7aa   :  { %4376 = vtanh.f32 %v1148_v27 }
 0x7b5   :  { %v4375_v28 = vpop.eup %4374 }
 0x7b6   :  { %v1153_v30 = vadd.f32 1.0, %v4375_v28 }
 0x7b7   :  { %v4377_v29 = vpop.eup %4376 }
 0x7b8   :  { %v1152_v35 = vadd.f32 1.0, %v4377_v29  ;;  %v1155_v38 = vmul.f32 %v1153_v30, %v1139_v36 }
 0x7ba   :  { %v1154_v37 = vmul.f32 %v1152_v35, %v1138_v32 }
 0x7bc   :  { %4093 = vmatprep.mubr.msk.f32.mxu0 %vm266_vm2, %v1154_v37 }
 0x7bd   :  { %4094 = vmatmul.mubr.msk.f32.vlgmr.msra.gmra.mxu0 %vm266_vm2, %v1155_v38 }
 0x7be   :  { %4108 = vmatpush3.msra.mxu0 %v1413_v16 }
 0x7bf   :  { %4109 = vmatprep.subr.mxu0 %v1412_v17 }
 0x7c0   :  { %4110 = vmatpush3.msra.mxu0 %v1412_v17 }
 0x7c1   :  { %4111 = vmatprep.subr.mxu0 %v1411_v18 }
 0x7c2   :  { %4112 = vmatpush3.msra.mxu0 %v1411_v18 }
 0x7c3   :  { %4113 = vmatprep.subr.mxu0 %v1410_v19 }
 0x7c4   :  { %4114 = vmatpush3.msra.mxu0 %v1410_v19 }
 0x7c5   :  { %4115 = vmatprep.subr.mxu0 %v1409_v20 }
 0x7c6   :  { %4116 = vmatpush3.msra.mxu0 %v1409_v20 }
 0x7c7   :  { %4117 = vmatprep.subr.mxu0 %v1408_v21 }
 0x7c8   :  { %4118 = vmatpush3.msra.mxu0 %v1408_v21 }
 0x7c9   :  { %4119 = vmatprep.subr.mxu0 %v1407_v22 }
 0x7ca   :  { %4120 = vmatpush3.msra.mxu0 %v1407_v22 }
 0x7cb   :  { %4121 = vmatprep.subr.mxu0 %v1406_v23 }
 0x7cc   :  { %4122 = vmatpush3.msra.mxu0 %v1406_v23  ;;  %v3777_v23 = vld [vmem:[%s5077_s26] ss:$0 sm:$0xff] }
 0x87d   :  { %v4095_v40 = vpop.f32.mrf.mxu0 }
 0x87e   :  { %v1240_v41 = vadd.f32 %v4095_v40, %v1043_v10 }
 0x87f   :  { %v1230_v42 = vpop.f32.mrf.mxu0 }
 0x880   :  { %v1249_v43 = vadd.f32 %v3763_v39, %v1240_v41  ;;  %v1239_v44 = vadd.f32 %v1230_v42, %v1038_v9  ;;  %v3765_v9 = vld [vmem:[%s5070_s10] ss:$0 sm:$0xff] }
 0x882   :  { %v1248_v45 = vadd.f32 %v3763_v39, %v1239_v44  ;;  %v1251_v46 = vadd.f32 %v1249_v43, %v4673_v33 }
 0x884   :  { %v1257_v47 = vsel %vm126_vm0, %v1251_v46, 0.0  ;;  %v1250_v48 = vadd.f32 %v1248_v45, %v4669_v31 }
 0x885   :  { %1258 = vadd.xlane.f32.xlu1 %v1257_v47 }
 0x886   :  { %v1254_v49 = vsel %vm126_vm0, %v1250_v48, 0.0 }
 0x887   :  { %1255 = vadd.xlane.f32.xlu0 %v1254_v49 }
 0x90e   :  { %v1259_v51 = vpop.xlane.xlu1 %1258 }
 0x90f   :  { %v1261_v52 = vmul.f32 0.03125, %v1259_v51 }
 0x910   :  { %v1256_v53 = vpop.xlane.xlu0 %1255 }
 0x911   :  { %v1260_v54 = vmul.f32 0.03125, %v1256_v53  ;;  %v1263_v55 = vsub.f32 %v1251_v46, %v1261_v52  ;;  %v1505_v52 = vld [vmem:[%s5072_s15 + $0x10] sm:$0xff]  ;;  %v1504_v53 = vld [vmem:[%s5072_s15 + $0x8] sm:$0xff] }
 0x913   :  { %v1262_v56 = vsub.f32 %v1250_v48, %v1260_v54  ;;  %v1265_v58 = vmul.f32 %v1263_v55, %v1263_v55  ;;  %v1503_v54 = vld [vmem:[%s5072_s15] sm:$0xff] }
 0x915   :  { %v1264_v57 = vmul.f32 %v1262_v56, %v1262_v56  ;;  %v1269_v31 = vsel %vm126_vm0, %v1265_v58, 0.0 }
 0x917   :  { %v1266_v33 = vsel %vm126_vm0, %v1264_v57, 0.0 }
 0x918   :  { %1267 = vadd.xlane.f32.xlu0 %v1266_v33 }
 0x91c   :  { %1270 = vadd.xlane.f32.xlu0 %v1269_v31  ;;  %v1614_v31 = vld [vmem:[%s5075_s22 + $0x8] sm:$0xff] }
 0x9a1   :  { %v1268_v0 = vpop.xlane.xlu0 %1267 }
 0x9a2   :  { %v1272_v1 = vmul.f32 0.03125, %v1268_v0 }
 0x9a4   :  { %v1274_v2 = vadd.f32 1e-12, %v1272_v1 }
 0x9a5   :  { %v1271_v3 = vpop.xlane.xlu0 %1270 }
 0x9a6   :  { %4378 = vrsqrt.f32 %v1274_v2  ;;  %v1273_v4 = vmul.f32 0.03125, %v1271_v3 }
 0x9a8   :  { %v1275_v5 = vadd.f32 1e-12, %v1273_v4 }
 0x9aa   :  { %4380 = vrsqrt.f32 %v1275_v5 }
 0x9b3   :  { %v4379_v6 = vpop.eup %4378 }
 0x9b4   :  { %v1278_v8 = vmul.f32 %v4379_v6, %v1262_v56  ;;  %v3769_v56 = vld [vmem:[%s5074_s18] ss:$0 sm:$0xff] }
 0x9b6   :  { %v1286_v10 = vmul.f32 %v3764_v7, %v1278_v8 }
 0x9b7   :  { %v4381_v11 = vpop.eup %4380 }
 0x9b8   :  { %v1279_v12 = vmul.f32 %v4381_v11, %v1263_v55  ;;  %v4794_v13 = vadd.f32 %v3765_v9, %v1286_v10 }
 0x9ba   :  { %v1287_v14 = vmul.f32 %v3764_v7, %v1279_v12  ;;  %4104 = vmatprep.mubr.msk.f32.mxu1 %vm126_vm0, %v4794_v13 }
 0x9bc   :  { %v4798_v15 = vadd.f32 %v3765_v9, %v1287_v14 }
 0x9be   :  { %4105 = vmatmul.mubr.msk.f32.vlgmr.msra.gmra.mxu1 %vm126_vm0, %v4798_v15 }
 0x9bf   :  { %4127 = vmatpush3.msra.mxu1 %v1506_v24 }
 0x9c0   :  { %4128 = vmatprep.subr.mxu1 %v1505_v52 }
 0x9c1   :  { %4129 = vmatpush3.msra.mxu1 %v1505_v52 }
 0x9c2   :  { %4130 = vmatprep.subr.mxu1 %v1504_v53 }
 0x9c3   :  { %4131 = vmatpush3.msra.mxu1 %v1504_v53 }
 0x9c4   :  { %4132 = vmatprep.subr.mxu1 %v1503_v54 }
 0x9c5   :  { %4133 = vmatpush3.msra.mxu1 %v1503_v54 }
 0x9c6   :  { %4137 = vmatprep.subr.mxu1 %v1614_v31 }
 0xa7e   :  { %v4106_v26 = vpop.f32.mrf.mxu1 }
 0xa7f   :  { %v1385_v27 = vadd.f32 %v4106_v26, %v3766_v25 }
 0xa80   :  { %v1379_v28 = vpop.f32.mrf.mxu1 }
 0xa81   :  { %v1391_v29 = vmul.f32 0.044715, %v1385_v27  ;;  %v1380_v30 = vadd.f32 %v3766_v25, %v1379_v28  ;;  %v1389_v48 = vmul.f32 0.5, %v1385_v27 }
 0xa83   :  { %v1393_v32 = vmul.f32 %v1391_v29, %v1385_v27  ;;  %v1390_v35 = vmul.f32 0.044715, %v1380_v30  ;;  %v1388_v46 = vmul.f32 0.5, %v1380_v30 }
 0xa85   :  { %v1395_v36 = vmul.f32 %v1393_v32, %v1385_v27  ;;  %v1392_v37 = vmul.f32 %v1390_v35, %v1380_v30 }
 0xa87   :  { %v1397_v38 = vadd.f32 %v1395_v36, %v1385_v27  ;;  %v1394_v40 = vmul.f32 %v1392_v37, %v1380_v30 }
 0xa89   :  { %v1399_v39 = vmul.f32 0.7978846, %v1397_v38  ;;  %v1396_v41 = vadd.f32 %v1394_v40, %v1380_v30 }
 0xa8b   :  { %4382 = vtanh.f32 %v1399_v39  ;;  %v1398_v42 = vmul.f32 0.7978846, %v1396_v41 }
 0xa8d   :  { %4384 = vtanh.f32 %v1398_v42 }
 0xa98   :  { %v4383_v43 = vpop.eup %4382 }
 0xa99   :  { %v1403_v45 = vadd.f32 1.0, %v4383_v43 }
 0xa9a   :  { %v4385_v44 = vpop.eup %4384 }
 0xa9b   :  { %v1402_v47 = vadd.f32 1.0, %v4385_v44  ;;  %v1405_v51 = vmul.f32 %v1403_v45, %v1389_v48  ;;  %v3783_v44 = vld [vmem:[%s4530_s21 + $0x38] sm:$0xff]  ;;  %v3782_v45 = vld [vmem:[%s4530_s21 + $0x30] sm:$0xff] }
 0xa9c   :  { %4144 = vmatprep.subr.mxu0 %v3783_v44 }
 0xa9d   :  { %v1404_v49 = vmul.f32 %v1402_v47, %v1388_v46  ;;  %v3781_v46 = vld [vmem:[%s4530_s21 + $0x28] sm:$0xff]  ;;  %v3780_v47 = vld [vmem:[%s4530_s21 + $0x20] sm:$0xff]  ;;  %s5080_s21 = sld [smem:[#allocation16_spill]] }
 0xa9f   :  { %4123 = vmatprep.mubr.msk.f32.mxu0 %vm1421_vm5, %v1404_v49 }
 0xaa0   :  { %4124 = vmatmul.mubr.msk.f32.vlgmr.msra.gmra.mxu0 %vm1421_vm5, %v1405_v51 }
 0xaa1   :  { %4145 = vmatpush3.msra.mxu0 %v3783_v44 }
 0xaa2   :  { %4146 = vmatprep.subr.mxu0 %v3782_v45 }
 0xaa3   :  { %4147 = vmatpush3.msra.mxu0 %v3782_v45 }
 0xaa4   :  { %4148 = vmatprep.subr.mxu0 %v3781_v46 }
 0xaa5   :  { %4149 = vmatpush3.msra.mxu0 %v3781_v46 }
 0xaa6   :  { %4150 = vmatprep.subr.mxu0 %v3780_v47 }
 0xaa7   :  { %4151 = vmatpush3.msra.mxu0 %v3780_v47 }
 0xaa8   :  { %4165 = vmatprep.subr.mxu0 %v4493_v34 }
 0xb60   :  { %v4125_v55 = vpop.f32.mrf.mxu0 }
 0xb61   :  { %v1500_v58 = vadd.f32 %v4125_v55, %v3769_v56 }
 0xb62   :  { %v1494_v57 = vpop.f32.mrf.mxu0 }
 0xb63   :  { %v1495_v33 = vadd.f32 %v3769_v56, %v1494_v57  ;;  %v3778_v56 = vld [vmem:[%s5078_s28] ss:$0 sm:$0xff] }
 0xb65   :  { %4134 = vmatprep.mubr.msk.f32.mxu1 %vm126_vm0, %v1495_v33 }
 0xb66   :  { %4135 = vmatmul.mubr.msk.f32.vlgmr.msra.gmra.mxu1 %vm126_vm0, %v1500_v58 }
 0xb67   :  { %4138 = vmatpush3.msra.mxu1 %v1614_v31 }
 0xb68   :  { %4139 = vmatprep.subr.mxu1 %v1613_v59 }
 0xb69   :  { %4140 = vmatpush3.msra.mxu1 %v1613_v59  ;;  %v3779_v59 = vld [vmem:[%s5079_s1] ss:$0 sm:$0xff] }
 0xb6a   :  { %4155 = vmatprep.subr.mxu1 %v4493_v34 }
 0xc26   :  { %v4136_v61 = vpop.f32.mrf.mxu1 }
 0xc27   :  { %v1592_v63 = vadd.f32 %v4136_v61, %v3772_v60 }
 0xc28   :  { %v1586_v0 = vpop.f32.mrf.mxu1 }
 0xc29   :  { %v1598_v1 = vmul.f32 0.044715, %v1592_v63  ;;  %v1587_v2 = vadd.f32 %v3772_v60, %v1586_v0  ;;  %v1596_v19 = vmul.f32 0.5, %v1592_v63 }
 0xc2b   :  { %v1600_v3 = vmul.f32 %v1598_v1, %v1592_v63  ;;  %v1597_v4 = vmul.f32 0.044715, %v1587_v2  ;;  %v1595_v17 = vmul.f32 0.5, %v1587_v2  ;;  %v3785_v1 = vld [vmem:[%s4535_s25 + $0x1] ss:$0 sm:$0xff]  ;;  %s5081_s25 = sld [smem:[#allocation17_spill]] }
 0xc2d   :  { %v1602_v5 = vmul.f32 %v1600_v3, %v1592_v63  ;;  %v1599_v6 = vmul.f32 %v1597_v4, %v1587_v2 }
 0xc2f   :  { %v1604_v7 = vadd.f32 %v1602_v5, %v1592_v63  ;;  %v1601_v8 = vmul.f32 %v1599_v6, %v1587_v2 }
 0xc31   :  { %v1606_v9 = vmul.f32 0.7978846, %v1604_v7  ;;  %v1603_v10 = vadd.f32 %v1601_v8, %v1587_v2 }
 0xc33   :  { %4386 = vtanh.f32 %v1606_v9  ;;  %v1605_v11 = vmul.f32 0.7978846, %v1603_v10 }
 0xc35   :  { %4388 = vtanh.f32 %v1605_v11 }
 0xc40   :  { %v4387_v12 = vpop.eup %4386 }
 0xc41   :  { %v1610_v16 = vadd.f32 1.0, %v4387_v12 }
 0xc42   :  { %v4389_v14 = vpop.eup %4388 }
 0xc43   :  { %v1609_v18 = vadd.f32 1.0, %v4389_v14  ;;  %v1612_v21 = vmul.f32 %v1610_v16, %v1596_v19 }
 0xc45   :  { %v1611_v20 = vmul.f32 %v1609_v18, %v1595_v17 }
 0xc47   :  { %4141 = vmatprep.mubr.msk.f32.mxu1 %vm266_vm2, %v1611_v20 }
 0xc48   :  { %4142 = vmatmul.mubr.msk.f32.vlgmr.msra.gmra.mxu1 %vm266_vm2, %v1612_v21 }
 0xc49   :  { %4157 = vmatprep.mubr.msk.f32.mxu1 %vm4494_vm1, %v4493_v34 }
 0xd08   :  { %v4143_v22 = vpop.f32.mrf.mxu1 }
 0xd09   :  { %v1697_v24 = vadd.f32 %v4143_v22, %v1500_v58 }
 0xd0a   :  { %v1687_v25 = vpop.f32.mrf.mxu1 }
 0xd0b   :  { %v1706_v26 = vadd.f32 %v3777_v23, %v1697_v24  ;;  %v1696_v27 = vadd.f32 %v1687_v25, %v1495_v33 }
 0xd0d   :  { %v1705_v28 = vadd.f32 %v3777_v23, %v1696_v27  ;;  %v1708_v29 = vadd.f32 %v1706_v26, %v4798_v15 }
 0xd0f   :  { %v1714_v30 = vsel %vm126_vm0, %v1708_v29, 0.0  ;;  %v1707_v32 = vadd.f32 %v1705_v28, %v4794_v13 }
 0xd10   :  { %1715 = vadd.xlane.f32.xlu1 %v1714_v30 }
 0xd11   :  { %v1711_v35 = vsel %vm126_vm0, %v1707_v32, 0.0 }
 0xd12   :  { %1712 = vadd.xlane.f32.xlu0 %v1711_v35 }
 0xd99   :  { %v1716_v36 = vpop.xlane.xlu1 %1715 }
 0xd9a   :  { %v1718_v37 = vmul.f32 0.03125, %v1716_v36 }
 0xd9b   :  { %v1713_v38 = vpop.xlane.xlu0 %1712 }
 0xd9c   :  { %v1720_v40 = vsub.f32 %v1708_v29, %v1718_v37  ;;  %v1717_v39 = vmul.f32 0.03125, %v1713_v38 }
 0xd9e   :  { %v1719_v41 = vsub.f32 %v1707_v32, %v1717_v39  ;;  %v1722_v42 = vmul.f32 %v1720_v40, %v1720_v40 }
 0xda0   :  { %v1726_v15 = vsel %vm126_vm0, %v1722_v42, 0.0  ;;  %v1721_v43 = vmul.f32 %v1719_v41, %v1719_v41 }
 0xda1   :  { %1727 = vadd.xlane.f32.xlu1 %v1726_v15 }
 0xda2   :  { %v1723_v13 = vsel %vm126_vm0, %v1721_v43, 0.0 }
 0xda3   :  { %1724 = vadd.xlane.f32.xlu0 %v1723_v13 }
 0xe2a   :  { %v1728_v48 = vpop.xlane.xlu1 %1727 }
 0xe2b   :  { %v1730_v49 = vmul.f32 0.03125, %v1728_v48 }
 0xe2c   :  { %v1725_v51 = vpop.xlane.xlu0 %1724 }
 0xe2d   :  { %v1732_v52 = vadd.f32 1e-12, %v1730_v49  ;;  %v1729_v53 = vmul.f32 0.03125, %v1725_v51 }
 0xe2f   :  { %4390 = vrsqrt.f32 %v1732_v52  ;;  %v1731_v54 = vadd.f32 1e-12, %v1729_v53 }
 0xe31   :  { %4392 = vrsqrt.f32 %v1731_v54 }
 0xe3c   :  { %v4391_v55 = vpop.eup %4390 }
 0xe3d   :  { %v1736_v57 = vmul.f32 %v4391_v55, %v1720_v40 }
 0xe3e   :  { %v4393_v33 = vpop.eup %4392 }
 0xe3f   :  { %v1735_v58 = vmul.f32 %v4393_v33, %v1719_v41  ;;  %v1744_v31 = vmul.f32 %v3778_v56, %v1736_v57 }
 0xe41   :  { %v1743_v60 = vmul.f32 %v3778_v56, %v1735_v58  ;;  %v4844_v63 = vadd.f32 %v3779_v59, %v1744_v31 }
 0xe43   :  { %v4842_v61 = vadd.f32 %v3779_v59, %v1743_v60 }
 0xe45   :  { %4152 = vmatprep.mubr.msk.f32.mxu0 %vm126_vm0, %v4842_v61 }
 0xe46   :  { %4153 = vmatmul.mubr.msk.f32.vlgmr.msra.gmra.mxu0 %vm126_vm0, %v4844_v63 }
 0xe47   :  { %4167 = vmatprep.mubr.msk.f32.mxu0 %vm4494_vm1, %v4493_v34 }
 0xf06   :  { %v4154_v0 = vpop.f32.mrf.mxu0 }
 0xf07   :  { %v4859_v4 = vadd.f32 %v4154_v0, %v3785_v1 }
 0xf08   :  { %v1838_v2 = vpop.f32.mrf.mxu0 }
 0xf09   :  { %v4853_v3 = vadd.f32 %v3785_v1, %v1838_v2 }
 0xf0b   :  { %2016 = vrot.lane.b32.xlu1 %v4853_v3, %s4495_s0  ;;  %1848 = vrot.lane.b32.xlu0 %v4853_v3, %s4496_s5 }
 0xf0f   :  { %2014 = vrot.lane.b32.xlu1 %v4853_v3, %s4497_s13  ;;  %2355 = vrot.lane.b32.xlu0 %v4859_v4, %s4495_s0 }
 0xf13   :  { %2187 = vrot.lane.b32.xlu1 %v4859_v4, %s4496_s5 }
 0xf17   :  { %2353 = vrot.lane.b32.xlu1 %v4859_v4, %s4497_s13 }
 0xf7d   :  { %v2017_v5 = vpop.permute.xlu1 %2016  ;;  %v1849_v6 = vpop.permute.xlu0 %1848 }
 0xf7e   :  { %4156 = vmatpush3.xpose.msk.msra.mxu1 %vm266_vm2, %v1849_v6  ;;  %4166 = vmatpush3.xpose.msk.msra.mxu0 %vm266_vm2, %v2017_v5 }
 0xf7f   :  { %4175 = vmatprep.subr.mxu0 %v4493_v34  ;;  %4160 = vmatprep.subr.mxu1 %v4493_v34 }
 0xf81   :  { %v2015_v7 = vpop.permute.xlu1 %2014  ;;  %4158 = vmatmul.mubr.msk.f32.vlgmr.msra.gmra.mxu1 %vm266_vm2, %v4853_v3  ;;  %v2356_v9 = vpop.permute.xlu0 %2355 }
 0xf82   :  { %4168 = vmatmul.mubr.msk.f32.vlgmr.msra.gmra.mxu0 %vm266_vm2, %v2015_v7  ;;  %4162 = vmatprep.mubr.msk.f32.mxu1 %vm4494_vm1, %v4493_v34 }
 0xf83   :  { %4177 = vmatprep.mubr.msk.f32.mxu0 %vm4494_vm1, %v4493_v34 }
 0xf85   :  { %v2188_v8 = vpop.permute.xlu1 %2187 }
 0xf86   :  { %4176 = vmatpush3.xpose.msk.msra.mxu0 %vm266_vm2, %v2188_v8 }
 0xf87   :  { %4185 = vmatprep.subr.mxu0 %v4493_v34 }
 0xf89   :  { %4178 = vmatmul.mubr.msk.f32.vlgmr.msra.gmra.mxu0 %vm266_vm2, %v4859_v4  ;;  %v2354_v10 = vpop.permute.xlu1 %2353 }
 0xf8a   :  { %4186 = vmatpush3.xpose.msk.msra.mxu0 %vm266_vm2, %v2356_v9  ;;  %4187 = vmatprep.mubr.msk.f32.mxu0 %vm4494_vm1, %v4493_v34 }
 0xf8d   :  { %4188 = vmatmul.mubr.msk.f32.vlgmr.msra.gmra.mxu0 %vm266_vm2, %v2354_v10 }
0x1041   :  { %v1920_v11 = vpop.f32.mrf.mxu1 }
0x1042   :  { %v1924_v12 = vmul.f32 0.25, %v1920_v11  ;;  %v2088_v14 = vpop.f32.mrf.mxu0 }
0x1043   :  { %v2092_v16 = vmul.f32 0.25, %v2088_v14  ;;  %v4159_v17 = vpop.f32.mrf.mxu1  ;;  %v3802_v14 = vld [vmem:[%s4540_s29 + $0x30] sm:$0xff] }
0x1044   :  { %v4169_v18 = vpop.f32.mrf.mxu0  ;;  %v1925_v19 = vadd.f32 %v1924_v12, %v4720_v50  ;;  %v3803_v12 = vld [vmem:[%s4540_s29 + $0x38] sm:$0xff]  ;;  %v3800_v17 = vld [vmem:[%s4540_s29 + $0x20] sm:$0xff] }
0x1045   :  { %v2093_v20 = vadd.f32 %v2092_v16, %v4720_v50  ;;  %4195 = vmatprep.subr.mxu0 %v3803_v12  ;;  %v3801_v16 = vld [vmem:[%s4540_s29 + $0x28] sm:$0xff]  ;;  %v3811_v18 = vld [vmem:[%s4550_s8 + $0x38] sm:$0xff]  ;;  %s4501_s29 = smov [#allocation3]  }
0x1046   :  { %v1926_v21 = vsel %vm347_vm3, %v1925_v19, -inf  ;;  %4196 = vmatpush3.msra.mxu0 %v3803_v12 }
0x1047   :  { %1927 = vmax.xlane.f32.xlu0 %v1926_v21  ;;  %v2094_v22 = vsel %vm347_vm3, %v2093_v20, -inf  ;;  %4197 = vmatprep.subr.mxu0 %v3802_v14 }
0x1048   :  { %2095 = vmax.xlane.f32.xlu1 %v2094_v22  ;;  %4198 = vmatpush3.msra.mxu0 %v3802_v14 }
0x1049   :  { %v2259_v23 = vpop.f32.mrf.mxu0  ;;  %4199 = vmatprep.subr.mxu0 %v3801_v16 }
0x104a   :  { %v2263_v24 = vmul.f32 0.25, %v2259_v23  ;;  %4200 = vmatpush3.msra.mxu0 %v3801_v16  ;;  %v3829_v16 = vld [vmem:[%s4580_s12 + $0x38] sm:$0xff] }
0x104b   :  { %v4179_v25 = vpop.f32.mrf.mxu0  ;;  %4201 = vmatprep.subr.mxu0 %v3800_v17 }
0x104c   :  { %v2264_v26 = vadd.f32 %v2263_v24, %v4726_v62  ;;  %4202 = vmatpush3.msra.mxu0 %v3800_v17  ;;  %v3810_v25 = vld [vmem:[%s4550_s8 + $0x30] sm:$0xff] }
0x104d   :  { %v2427_v27 = vpop.f32.mrf.mxu0  ;;  %v3828_v17 = vld [vmem:[%s4580_s12 + $0x30] sm:$0xff] }
0x104e   :  { %v2431_v28 = vmul.f32 0.25, %v2427_v27  ;;  %v2265_v29 = vsel %vm347_vm3, %v2264_v26, -inf  ;;  %v3808_v27 = vld [vmem:[%s4550_s8 + $0x20] sm:$0xff] }
0x104f   :  { %2266 = vmax.xlane.f32.xlu0 %v2265_v29  ;;  %v4189_v30 = vpop.f32.mrf.mxu0  ;;  %v3805_v29 = vld [vmem:[%s4545_s3 + $0x1] ss:$0 sm:$0xff]  ;;  %s3699_s3 = sshll.u32 %s4501_s29, 4  ;;  %s3700_s3 = int_to_ptr.vmem [resolvable:$true] %s3699_s3 }
0x1050   :  { %v2432_v32 = vadd.f32 %v2431_v28, %v4726_v62  ;;  %p4447_p1 = scmp.lt.s32.totalorder %s3700_s3, %s3700_s3 }
0x1052   :  { %v2433_v50 = vsel %vm347_vm3, %v2432_v32, -inf }
0x1053   :  { %2434 = vmax.xlane.f32.xlu0 %v2433_v50 }
0x10d0   :  { %v1928_v35 = vpop.xlane.xlu0 %1927 }
0x10d1   :  { %v1929_v36 = vsub.f32 %v1925_v19, %v1928_v35  ;;  %v2096_v37 = vpop.xlane.xlu1 %2095  ;;  %v3817_v35 = vld [vmem:[%s4560_s19 + $0x18] sm:$0xff] }
0x10d2   :  { %v2097_v38 = vsub.f32 %v2093_v20, %v2096_v37  ;;  %4217 = vmatprep.subr.mxu0 %v3817_v35  ;;  %v3813_v37 = vld [vmem:[%s4555_s14 + $0x1] ss:$0 sm:$0xff] }
0x10d3   :  { %v1930_v40 = vmul.f32 1.442695, %v1929_v36  ;;  %v3816_v36 = vld [vmem:[%s4560_s19 + $0x10] sm:$0xff] }
0x10d4   :  { %v2098_v39 = vmul.f32 1.442695, %v2097_v38 }
0x10d5   :  { %4394 = vpow2.f32 %v1930_v40 }
0x10d6   :  { %4396 = vpow2.f32 %v2098_v39 }
0x10d8   :  { %v2267_v41 = vpop.xlane.xlu0 %2266 }
0x10d9   :  { %v2268_v42 = vsub.f32 %v2264_v26, %v2267_v41  ;;  %v3809_v26 = vld [vmem:[%s4550_s8 + $0x28] sm:$0xff]  ;;  %s4442_s8 = scalar_lea.vmem %s3700_s3, 32 }
0x10da   :  { %p4443_p0 = scmp.ne.s32.totalorder %s3700_s3, %s4442_s8  ;;  %p4448_p2 = scmp.lt.s32.totalorder %s4442_s8, %s4442_s8 }
0x10db   :  { %v2269_v15 = vmul.f32 1.442695, %v2268_v42 }
0x10dc   :  { %v2435_v47 = vpop.xlane.xlu0 %2434  ;;  %p4449_p3 = por %p4448_p2, %p4447_p1 }
0x10dd   :  { %4398 = vpow2.f32 %v2269_v15  ;;  %v2436_v48 = vsub.f32 %v2432_v32, %v2435_v47 }
0x10de   :  { %p4450_p4 = pnand %p4449_p3, %p4443_p0 }
0x10df   :  { %v2437_v49 = vmul.f32 1.442695, %v2436_v48 }
0x10e1   :  { %4400 = vpow2.f32 %v2437_v49 }
0x10e2   :  { %v4395_v43 = vpop.eup %4394 }
0x10e3   :  { %v4397_v13 = vpop.eup %4396  ;;  %v1932_v44 = vsel %vm347_vm3, %v4395_v43, 0.0 }
0x10e4   :  { %1933 = vadd.xlane.f32.xlu0 %v1932_v44  ;;  %v2100_v62 = vsel %vm347_vm3, %v4397_v13, 0.0 }
0x10e5   :  { %2101 = vadd.xlane.f32.xlu1 %v2100_v62 }
0x10ea   :  { %v4399_v45 = vpop.eup %4398 }
0x10eb   :  { %v2271_v46 = vsel %vm347_vm3, %v4399_v45, 0.0 }
0x10ec   :  { %2272 = vadd.xlane.f32.xlu0 %v2271_v46 }
0x10ee   :  { %v4401_v51 = vpop.eup %4400 }
0x10ef   :  { %v2439_v52 = vsel %vm347_vm3, %v4401_v51, 0.0 }
0x10f6   :  { %2105 = vrot.lane.b32.xlu1 %v4853_v3, %s4498_s9 }
0x10fa   :  { %2276 = vrot.lane.b32.xlu1 %v4859_v4, %s4499_s17 }
0x1102   :  { %1937 = vrot.lane.b32.xlu0 %v4853_v3, %s4499_s17 }
0x111e   :  { %2440 = vadd.xlane.f32.xlu1 %v2439_v52 }
0x112f   :  { %2444 = vrot.lane.b32.xlu1 %v4859_v4, %s4498_s9 }
0x116d   :  { %v1934_v53 = vpop.xlane.xlu0 %1933 }
0x116e   :  { %4402 = vrcp.f32 %v1934_v53  ;;  %v2102_v54 = vpop.xlane.xlu1 %2101 }
0x116f   :  { %4404 = vrcp.f32 %v2102_v54 }
0x1172   :  { %v2106_v33 = vpop.permute.xlu1 %2105 }
0x1175   :  { %v2273_v55 = vpop.xlane.xlu0 %2272 }
0x1176   :  { %4406 = vrcp.f32 %v2273_v55  ;;  %v2277_v60 = vpop.permute.xlu1 %2276 }
0x1179   :  { %v1938_v56 = vpop.permute.xlu0 %1937 }
0x117a   :  { %4161 = vmatpush3.msra.mxu1 %v1938_v56 }
0x117b   :  { %v4403_v57 = vpop.eup %4402  ;;  %4170 = vmatprep.subr.mxu1 %v4493_v34 }
0x117c   :  { %v1936_v58 = vmul.f32 %v4403_v57, %v4395_v43  ;;  %v4405_v31 = vpop.eup %4404 }
0x117d   :  { %v2104_v59 = vmul.f32 %v4405_v31, %v4397_v13 }
0x117e   :  { %4163 = vmatmul.mubr.msk.f32.vlgmr.msra.gmra.mxu1 %vm347_vm3, %v1936_v58  ;;  %v3821_v58 = vld [vmem:[%s4565_s24 + $0x1] ss:$0 sm:$0xff] }
0x117f   :  { %4171 = vmatpush3.msra.mxu1 %v2106_v33  ;;  %4172 = vmatprep.mubr.msk.f32.mxu1 %vm4494_vm1, %v4493_v34 }
0x1180   :  { %4180 = vmatprep.subr.mxu1 %v4493_v34 }
0x1182   :  { %4173 = vmatmul.mubr.msk.f32.vlgmr.msra.gmra.mxu1 %vm347_vm3, %v2104_v59 }
0x1183   :  { %v4407_v0 = vpop.eup %4406  ;;  %4181 = vmatpush3.msra.mxu1 %v2277_v60  ;;  %4182 = vmatprep.mubr.msk.f32.mxu1 %vm4494_vm1, %v4493_v34 }
0x1184   :  { %v2275_v1 = vmul.f32 %v4407_v0, %v4399_v45  ;;  %4190 = vmatprep.subr.mxu1 %v4493_v34 }
0x1186   :  { %4183 = vmatmul.mubr.msk.f32.vlgmr.msra.gmra.mxu1 %vm347_vm3, %v2275_v1 }
0x1187   :  { %4192 = vmatprep.mubr.msk.f32.mxu1 %vm4494_vm1, %v4493_v34 }
0x11a7   :  { %v2441_v2 = vpop.xlane.xlu1 %2440 }
0x11a8   :  { %4408 = vrcp.f32 %v2441_v2 }
0x11ab   :  { %v2445_v3 = vpop.permute.xlu1 %2444 }
0x11ac   :  { %4191 = vmatpush3.msra.mxu1 %v2445_v3 }
0x11ad   :  { %4206 = vmatprep.subr.mxu1 %v3811_v18 }
0x11b5   :  { %v4409_v4 = vpop.eup %4408 }
0x11b6   :  { %v2443_v5 = vmul.f32 %v4409_v4, %v4401_v51 }
0x11b8   :  { %4193 = vmatmul.mubr.msk.f32.vlgmr.msra.gmra.mxu1 %vm347_vm3, %v2443_v5 }
0x11b9   :  { %4207 = vmatpush3.msra.mxu1 %v3811_v18  ;;  %v3827_v18 = vld [vmem:[%s4580_s12 + $0x28] sm:$0xff] }
0x11ba   :  { %4208 = vmatprep.subr.mxu1 %v3810_v25 }
0x11bb   :  { %4209 = vmatpush3.msra.mxu1 %v3810_v25 }
0x11bc   :  { %4210 = vmatprep.subr.mxu1 %v3809_v26 }
0x11bd   :  { %4211 = vmatpush3.msra.mxu1 %v3809_v26 }
0x11be   :  { %4212 = vmatprep.subr.mxu1 %v3808_v27 }
0x11bf   :  { %4213 = vmatpush3.msra.mxu1 %v3808_v27  ;;  %v3824_v27 = vld [vmem:[%s4570_s30 + $0x1] ss:$0 sm:$0xff] }
0x11c0   :  { %4224 = vmatprep.subr.mxu1 %v3829_v16 }
0x123e   :  { %v2009_v6 = vpop.f32.mrf.mxu1 }
0x123f   :  { %2013 = vst.msk [vmem:[#allocation2] sm:$0xff] %vm266_vm2, %v2009_v6 }
0x1240   :  { %v4164_v7 = vpop.f32.mrf.mxu1 }
0x1242   :  { %v2177_v8 = vpop.f32.mrf.mxu1 }
0x1243   :  { %2182 = vrot.lane.b32.xlu0 %v2177_v8, %s4500_s7 }
0x1244   :  { %v4174_v9 = vpop.f32.mrf.mxu1 }
0x1246   :  { %v2348_v10 = vpop.f32.mrf.mxu1 }
0x1247   :  { %2352 = vst.msk [vmem:[#allocation2 + $0x8] sm:$0xff] %vm266_vm2, %v2348_v10 }
0x1248   :  { %v4184_v11 = vpop.f32.mrf.mxu1 }
0x1278   :  { %v2516_v19 = vpop.f32.mrf.mxu1 }
0x1279   :  { %2521 = vrot.lane.b32.xlu1 %v2516_v19, %s4500_s7  ;;  %v3826_v19 = vld [vmem:[%s4580_s12 + $0x20] sm:$0xff] }
0x127a   :  { %v4194_v20 = vpop.f32.mrf.mxu1 }
0x12b5   :  { %v2183_v21 = vpop.permute.xlu0 %2182 }
0x12b6   :  { %2185 = vst.msk [vmem:[#allocation2] sm:$0xff] %vm607_vm4, %v2183_v21 }
0x12bd   :  { %v2525_v22 = vld [vmem:[#allocation2] sm:$0xff] }
0x12be   :  { %4203 = vmatprep.mubr.msk.f32.mxu0 %vm126_vm0, %v2525_v22 }
0x12eb   :  { %v2522_v23 = vpop.permute.xlu1 %2521 }
0x12ec   :  { %2524 = vst.msk [vmem:[#allocation2 + $0x8] sm:$0xff] %vm607_vm4, %v2522_v23 }
0x12f3   :  { %v2526_v24 = vld [vmem:[#allocation2 + $0x8] sm:$0xff] }
0x12f4   :  { %4204 = vmatmul.mubr.msk.f32.vlgmr.msra.gmra.mxu0 %vm126_vm0, %v2526_v24 }
0x12f5   :  { %4218 = vmatpush3.msra.mxu0 %v3817_v35 }
0x12f6   :  { %4219 = vmatprep.subr.mxu0 %v3816_v36 }
0x12f7   :  { %4220 = vmatpush3.msra.mxu0 %v3816_v36 }
0x13b4   :  { %v4205_v28 = vpop.f32.mrf.mxu0 }
0x13b5   :  { %v2618_v50 = vadd.f32 %v4205_v28, %v3805_v29 }
0x13b6   :  { %v2612_v30 = vpop.f32.mrf.mxu0 }
0x13b7   :  { %v2613_v32 = vadd.f32 %v3805_v29, %v2612_v30  ;;  %v3825_v29 = vld [vmem:[%s5070_s10 + $0x1] ss:$0 sm:$0xff] }
0x13b9   :  { %4214 = vmatprep.mubr.msk.f32.mxu1 %vm126_vm0, %v2613_v32 }
0x13ba   :  { %4215 = vmatmul.mubr.msk.f32.vlgmr.msra.gmra.mxu1 %vm126_vm0, %v2618_v50 }
0x13bb   :  { %4225 = vmatpush3.msra.mxu1 %v3829_v16 }
0x13bc   :  { %4226 = vmatprep.subr.mxu1 %v3828_v17 }
0x13bd   :  { %4227 = vmatpush3.msra.mxu1 %v3828_v17 }
0x13be   :  { %4228 = vmatprep.subr.mxu1 %v3827_v18 }
0x13bf   :  { %4229 = vmatpush3.msra.mxu1 %v3827_v18 }
0x13c0   :  { %4230 = vmatprep.subr.mxu1 %v3826_v19 }
0x13c1   :  { %4231 = vmatpush3.msra.mxu1 %v3826_v19 }
0x147a   :  { %v4216_v38 = vpop.f32.mrf.mxu1 }
0x147b   :  { %v2712_v40 = vadd.f32 %v4216_v38, %v3813_v37  ;;  %v3841_v38 = vld [vmem:[%s5071_s11 + $0x78] sm:$0xff] }
0x147c   :  { %v2706_v39 = vpop.f32.mrf.mxu1  ;;  %4235 = vmatprep.subr.mxu0 %v3841_v38 }
0x147d   :  { %v2718_v41 = vmul.f32 0.044715, %v2712_v40  ;;  %v2707_v42 = vadd.f32 %v3813_v37, %v2706_v39  ;;  %v2716_v55 = vmul.f32 0.5, %v2712_v40  ;;  %v3839_v39 = vld [vmem:[%s5071_s11 + $0x68] sm:$0xff] }
0x147f   :  { %v2720_v15 = vmul.f32 %v2718_v41, %v2712_v40  ;;  %v2717_v43 = vmul.f32 0.044715, %v2707_v42  ;;  %v2715_v53 = vmul.f32 0.5, %v2707_v42  ;;  %v3838_v41 = vld [vmem:[%s5071_s11 + $0x60] sm:$0xff] }
0x1481   :  { %v2722_v13 = vmul.f32 %v2720_v15, %v2712_v40  ;;  %v2719_v44 = vmul.f32 %v2717_v43, %v2707_v42  ;;  %v3836_v15 = vld [vmem:[%s5071_s11 + $0x50] sm:$0xff]  ;;  %v3835_v43 = vld [vmem:[%s5071_s11 + $0x48] sm:$0xff] }
0x1483   :  { %v2724_v62 = vadd.f32 %v2722_v13, %v2712_v40  ;;  %v2721_v45 = vmul.f32 %v2719_v44, %v2707_v42  ;;  %v3840_v40 = vld [vmem:[%s5071_s11 + $0x70] sm:$0xff]  ;;  %v3834_v13 = vld [vmem:[%s5071_s11 + $0x40] sm:$0xff]  ;;  %v3849_v44 = vld [vmem:[%s5072_s15 + $0x38] sm:$0xff] }
0x1484   :  { %4254 = vmatprep.subr.mxu1 %v3849_v44 }
0x1485   :  { %v2726_v46 = vmul.f32 0.7978846, %v2724_v62  ;;  %v2723_v47 = vadd.f32 %v2721_v45, %v2707_v42  ;;  %v3837_v42 = vld [vmem:[%s5071_s11 + $0x58] sm:$0xff]  ;;  %v3831_v62 = vld [vmem:[%s5073_s16 + $0x1] ss:$0 sm:$0xff] }
0x1487   :  { %4410 = vtanh.f32 %v2726_v46  ;;  %v2725_v48 = vmul.f32 0.7978846, %v2723_v47 }
0x1489   :  { %4412 = vtanh.f32 %v2725_v48 }
0x1494   :  { %v4411_v49 = vpop.eup %4410 }
0x1495   :  { %v2730_v52 = vadd.f32 1.0, %v4411_v49 }
0x1496   :  { %v4413_v51 = vpop.eup %4412 }
0x1497   :  { %v2729_v54 = vadd.f32 1.0, %v4413_v51  ;;  %v2732_v57 = vmul.f32 %v2730_v52, %v2716_v55 }
0x1499   :  { %v2731_v56 = vmul.f32 %v2729_v54, %v2715_v53 }
0x149b   :  { %4221 = vmatprep.mubr.msk.f32.mxu0 %vm266_vm2, %v2731_v56 }
0x149c   :  { %4222 = vmatmul.mubr.msk.f32.vlgmr.msra.gmra.mxu0 %vm266_vm2, %v2732_v57 }
0x149d   :  { %4236 = vmatpush3.msra.mxu0 %v3841_v38 }
0x149e   :  { %4237 = vmatprep.subr.mxu0 %v3840_v40 }
0x149f   :  { %4238 = vmatpush3.msra.mxu0 %v3840_v40 }
0x14a0   :  { %4239 = vmatprep.subr.mxu0 %v3839_v39 }
0x14a1   :  { %4240 = vmatpush3.msra.mxu0 %v3839_v39 }
0x14a2   :  { %4241 = vmatprep.subr.mxu0 %v3838_v41 }
0x14a3   :  { %4242 = vmatpush3.msra.mxu0 %v3838_v41 }
0x14a4   :  { %4243 = vmatprep.subr.mxu0 %v3837_v42 }
0x14a5   :  { %4244 = vmatpush3.msra.mxu0 %v3837_v42 }
0x14a6   :  { %4245 = vmatprep.subr.mxu0 %v3836_v15 }
0x14a7   :  { %4246 = vmatpush3.msra.mxu0 %v3836_v15  ;;  %v3859_v15 = vld [vmem:[%s5077_s26 + $0x1] ss:$0 sm:$0xff] }
0x14a8   :  { %4247 = vmatprep.subr.mxu0 %v3835_v43 }
0x14a9   :  { %4248 = vmatpush3.msra.mxu0 %v3835_v43 }
0x14aa   :  { %4249 = vmatprep.subr.mxu0 %v3834_v13 }
0x14ab   :  { %4250 = vmatpush3.msra.mxu0 %v3834_v13 }
0x14ac   :  { %4272 = vmatprep.subr.mxu0 %v4493_v34 }
0x155c   :  { %v4223_v33 = vpop.f32.mrf.mxu0 }
0x155d   :  { %v2818_v31 = vadd.f32 %v4223_v33, %v2618_v50 }
0x155e   :  { %v2808_v59 = vpop.f32.mrf.mxu0 }
0x155f   :  { %v2828_v60 = vadd.f32 %v3821_v58, %v2818_v31  ;;  %v2817_v0 = vadd.f32 %v2808_v59, %v2613_v32 }
0x1561   :  { %v2827_v1 = vadd.f32 %v3821_v58, %v2817_v0  ;;  %v2830_v2 = vadd.f32 %v2828_v60, %v4844_v63 }
0x1563   :  { %v2838_v3 = vsel %vm126_vm0, %v2830_v2, 0.0  ;;  %v2829_v4 = vadd.f32 %v2827_v1, %v4842_v61 }
0x1564   :  { %2839 = vadd.xlane.f32.xlu1 %v2838_v3 }
0x1565   :  { %v2835_v5 = vsel %vm126_vm0, %v2829_v4, 0.0 }
0x1566   :  { %2836 = vadd.xlane.f32.xlu0 %v2835_v5  ;;  %v3848_v5 = vld [vmem:[%s5072_s15 + $0x30] sm:$0xff] }
0x15ed   :  { %v2840_v6 = vpop.xlane.xlu1 %2839 }
0x15ee   :  { %v2842_v7 = vmul.f32 0.03125, %v2840_v6  ;;  %v3847_v6 = vld [vmem:[%s5072_s15 + $0x28] sm:$0xff] }
0x15ef   :  { %v2837_v8 = vpop.xlane.xlu0 %2836 }
0x15f0   :  { %v2841_v9 = vmul.f32 0.03125, %v2837_v8  ;;  %v2844_v10 = vsub.f32 %v2830_v2, %v2842_v7  ;;  %v3846_v7 = vld [vmem:[%s5072_s15 + $0x20] sm:$0xff] }
0x15f2   :  { %v2843_v11 = vsub.f32 %v2829_v4, %v2841_v9  ;;  %v2846_v14 = vmul.f32 %v2844_v10, %v2844_v10  ;;  %v3843_v9 = vld [vmem:[%s5074_s18 + $0x1] ss:$0 sm:$0xff] }
0x15f4   :  { %v2845_v12 = vmul.f32 %v2843_v11, %v2843_v11  ;;  %v2850_v61 = vsel %vm126_vm0, %v2846_v14, 0.0  ;;  %v3854_v14 = vld [vmem:[%s5075_s22 + $0x10] sm:$0xff] }
0x15f6   :  { %v2847_v63 = vsel %vm126_vm0, %v2845_v12, 0.0 }
0x15f7   :  { %2848 = vadd.xlane.f32.xlu0 %v2847_v63  ;;  %v3855_v63 = vld [vmem:[%s5075_s22 + $0x18] sm:$0xff] }
0x15fb   :  { %2851 = vadd.xlane.f32.xlu0 %v2850_v61  ;;  %v3851_v61 = vld [vmem:[%s5076_s23 + $0x1] ss:$0 sm:$0xff] }
0x1680   :  { %v2849_v20 = vpop.xlane.xlu0 %2848 }
0x1681   :  { %v2853_v21 = vmul.f32 0.03125, %v2849_v20 }
0x1683   :  { %v2855_v22 = vadd.f32 1e-12, %v2853_v21 }
0x1684   :  { %v2852_v23 = vpop.xlane.xlu0 %2851 }
0x1685   :  { %4414 = vrsqrt.f32 %v2855_v22  ;;  %v2854_v24 = vmul.f32 0.03125, %v2852_v23 }
0x1687   :  { %v2856_v25 = vadd.f32 1e-12, %v2854_v24 }
0x1689   :  { %4416 = vrsqrt.f32 %v2856_v25 }
0x1692   :  { %v4415_v26 = vpop.eup %4414 }
0x1693   :  { %v2859_v28 = vmul.f32 %v4415_v26, %v2843_v11 }
0x1695   :  { %v2867_v30 = vmul.f32 %v3824_v27, %v2859_v28 }
0x1696   :  { %v4417_v32 = vpop.eup %4416 }
0x1697   :  { %v2860_v50 = vmul.f32 %v4417_v32, %v2844_v10  ;;  %v4958_v35 = vadd.f32 %v3825_v29, %v2867_v30 }
0x1699   :  { %v2868_v36 = vmul.f32 %v3824_v27, %v2860_v50  ;;  %4232 = vmatprep.mubr.msk.f32.mxu1 %vm126_vm0, %v4958_v35 }
0x169b   :  { %v4962_v37 = vadd.f32 %v3825_v29, %v2868_v36 }
0x169d   :  { %4233 = vmatmul.mubr.msk.f32.vlgmr.msra.gmra.mxu1 %vm126_vm0, %v4962_v37 }
0x169e   :  { %4255 = vmatpush3.msra.mxu1 %v3849_v44 }
0x169f   :  { %4256 = vmatprep.subr.mxu1 %v3848_v5 }
0x16a0   :  { %4257 = vmatpush3.msra.mxu1 %v3848_v5 }
0x16a1   :  { %4258 = vmatprep.subr.mxu1 %v3847_v6 }
0x16a2   :  { %4259 = vmatpush3.msra.mxu1 %v3847_v6 }
0x16a3   :  { %4260 = vmatprep.subr.mxu1 %v3846_v7 }
0x16a4   :  { %4261 = vmatpush3.msra.mxu1 %v3846_v7 }
0x16a5   :  { %4265 = vmatprep.subr.mxu1 %v3855_v63 }
0x175d   :  { %v4234_v45 = vpop.f32.mrf.mxu1 }
0x175e   :  { %v2968_v46 = vadd.f32 %v4234_v45, %v3831_v62 }
0x175f   :  { %v2962_v47 = vpop.f32.mrf.mxu1 }
0x1760   :  { %v2974_v48 = vmul.f32 0.044715, %v2968_v46  ;;  %v2963_v49 = vadd.f32 %v3831_v62, %v2962_v47  ;;  %v2972_v2 = vmul.f32 0.5, %v2968_v46 }
0x1762   :  { %v2976_v51 = vmul.f32 %v2974_v48, %v2968_v46  ;;  %v2973_v52 = vmul.f32 0.044715, %v2963_v49  ;;  %v2971_v0 = vmul.f32 0.5, %v2963_v49 }
0x1764   :  { %v2978_v53 = vmul.f32 %v2976_v51, %v2968_v46  ;;  %v2975_v54 = vmul.f32 %v2973_v52, %v2963_v49 }
0x1766   :  { %v2980_v55 = vadd.f32 %v2978_v53, %v2968_v46  ;;  %v2977_v56 = vmul.f32 %v2975_v54, %v2963_v49 }
0x1768   :  { %v2982_v57 = vmul.f32 0.7978846, %v2980_v55  ;;  %v2979_v33 = vadd.f32 %v2977_v56, %v2963_v49 }
0x176a   :  { %4418 = vtanh.f32 %v2982_v57  ;;  %v2981_v58 = vmul.f32 0.7978846, %v2979_v33 }
0x176c   :  { %4420 = vtanh.f32 %v2981_v58  ;;  %v3346_v58 = vld [vmem:[%s5080_s21 + $0x18] sm:$0xff] }
0x1777   :  { %v4419_v31 = vpop.eup %4418 }
0x1778   :  { %v2986_v60 = vadd.f32 1.0, %v4419_v31  ;;  %v3345_v31 = vld [vmem:[%s5080_s21 + $0x10] sm:$0xff] }
0x1779   :  { %v4421_v59 = vpop.eup %4420 }
0x177a   :  { %v2985_v1 = vadd.f32 1.0, %v4421_v59  ;;  %v2988_v4 = vmul.f32 %v2986_v60, %v2972_v2  ;;  %v3344_v59 = vld [vmem:[%s5080_s21 + $0x8] sm:$0xff]  ;;  %v3343_v60 = vld [vmem:[%s5080_s21] sm:$0xff] }
0x177c   :  { %v2987_v3 = vmul.f32 %v2985_v1, %v2971_v0 }
0x177e   :  { %4251 = vmatprep.mubr.msk.f32.mxu0 %vm1421_vm5, %v2987_v3 }
0x177f   :  { %4252 = vmatmul.mubr.msk.f32.vlgmr.msra.gmra.mxu0 %vm1421_vm5, %v2988_v4 }
0x1780   :  { %4280 = vmatprep.mubr.msk.f32.mxu0 %vm4494_vm1, %v4493_v34  ;;  %4273 = vmatpush3.msra.mxu0 %v3346_v58 }
0x1781   :  { %4274 = vmatprep.subr.mxu0 %v4493_v34 }
0x1782   :  { %4275 = vmatpush3.msra.mxu0 %v3345_v31 }
0x1783   :  { %4276 = vmatprep.subr.mxu0 %v4493_v34 }
0x1784   :  { %4277 = vmatpush3.msra.mxu0 %v3344_v59 }
0x1785   :  { %4278 = vmatprep.subr.mxu0 %v4493_v34 }
0x1786   :  { %4279 = vmatpush3.msra.mxu0 %v3343_v60 }
0x1787   :  { %4294 = vmatprep.subr.mxu0 %v4493_v34 }
0x183f   :  { %v4253_v8 = vpop.f32.mrf.mxu0 }
0x1840   :  { %v3084_v12 = vadd.f32 %v4253_v8, %v3843_v9 }
0x1841   :  { %v3078_v10 = vpop.f32.mrf.mxu0 }
0x1842   :  { %v3079_v11 = vadd.f32 %v3843_v9, %v3078_v10  ;;  %v3862_v9 = vld [vmem:[%s5078_s28 + $0x1] ss:$0 sm:$0xff] }
0x1844   :  { %4262 = vmatprep.mubr.msk.f32.mxu1 %vm126_vm0, %v3079_v11 }
0x1845   :  { %4263 = vmatmul.mubr.msk.f32.vlgmr.msra.gmra.mxu1 %vm126_vm0, %v3084_v12 }
0x1846   :  { %4266 = vmatpush3.msra.mxu1 %v3855_v63 }
0x1847   :  { %4267 = vmatprep.subr.mxu1 %v3854_v14 }
0x1848   :  { %4268 = vmatpush3.msra.mxu1 %v3854_v14 }
0x1849   :  { %4283 = vmatprep.subr.mxu1 %v4493_v34 }
0x1905   :  { %v4264_v16 = vpop.f32.mrf.mxu1 }
0x1906   :  { %v3178_v17 = vadd.f32 %v4264_v16, %v3851_v61  ;;  %v3425_v16 = vld [vmem:[%s4640_s6 + $0x18] sm:$0xff] }
0x1907   :  { %v3172_v18 = vpop.f32.mrf.mxu1 }
0x1908   :  { %v3184_v19 = vmul.f32 0.044715, %v3178_v17  ;;  %v3173_v20 = vadd.f32 %v3851_v61, %v3172_v18  ;;  %v3182_v40 = vmul.f32 0.5, %v3178_v17  ;;  %v3423_v18 = vld [vmem:[%s4640_s6 + $0x8] sm:$0xff] }
0x190a   :  { %v3186_v21 = vmul.f32 %v3184_v19, %v3178_v17  ;;  %v3183_v22 = vmul.f32 0.044715, %v3173_v20  ;;  %v3181_v36 = vmul.f32 0.5, %v3173_v20  ;;  %v3422_v19 = vld [vmem:[%s4640_s6] sm:$0xff] }
0x190c   :  { %v3188_v23 = vmul.f32 %v3186_v21, %v3178_v17  ;;  %v3185_v24 = vmul.f32 %v3183_v22, %v3173_v20 }
0x190e   :  { %v3190_v25 = vadd.f32 %v3188_v23, %v3178_v17  ;;  %v3187_v26 = vmul.f32 %v3185_v24, %v3173_v20  ;;  %v3424_v17 = vld [vmem:[%s4640_s6 + $0x10] sm:$0xff]  ;;  %v3522_v24 = vld [vmem:[%s5081_s25] sm:$0x1] }
0x1910   :  { %v3192_v27 = vmul.f32 0.7978846, %v3190_v25  ;;  %v3189_v28 = vadd.f32 %v3187_v26, %v3173_v20  ;;  %v3347_v20 = vld [vmem:[%s5081_s25] sm:$0x1] }
0x1912   :  { %4422 = vtanh.f32 %v3192_v27  ;;  %v3191_v29 = vmul.f32 0.7978846, %v3189_v28 }
0x1914   :  { %4424 = vtanh.f32 %v3191_v29 }
0x191f   :  { %v4423_v30 = vpop.eup %4422 }
0x1920   :  { %v3196_v50 = vadd.f32 1.0, %v4423_v30 }
0x1921   :  { %v4425_v32 = vpop.eup %4424 }
0x1922   :  { %v3195_v38 = vadd.f32 1.0, %v4425_v32  ;;  %v3198_v41 = vmul.f32 %v3196_v50, %v3182_v40 }
0x1924   :  { %v3197_v39 = vmul.f32 %v3195_v38, %v3181_v36 }
0x1926   :  { %4269 = vmatprep.mubr.msk.f32.mxu1 %vm266_vm2, %v3197_v39 }
0x1927   :  { %4270 = vmatmul.mubr.msk.f32.vlgmr.msra.gmra.mxu1 %vm266_vm2, %v3198_v41 }
0x1928   :  { %4291 = vmatprep.mubr.msk.f32.mxu1 %vm4494_vm1, %v4493_v34  ;;  %4284 = vmatpush3.msra.mxu1 %v3425_v16 }
0x1929   :  { %4285 = vmatprep.subr.mxu1 %v4493_v34 }
0x192a   :  { %4286 = vmatpush3.msra.mxu1 %v3424_v17 }
0x192b   :  { %4287 = vmatprep.subr.mxu1 %v4493_v34 }
0x192c   :  { %4288 = vmatpush3.msra.mxu1 %v3423_v18 }
0x192d   :  { %4289 = vmatprep.subr.mxu1 %v4493_v34 }
0x192e   :  { %4290 = vmatpush3.msra.mxu1 %v3422_v19 }
0x192f   :  { %4305 = vmatprep.subr.mxu1 %v4493_v34 }
0x19e7   :  { %v4271_v42 = vpop.f32.mrf.mxu1 }
0x19e8   :  { %v3284_v43 = vadd.f32 %v4271_v42, %v3084_v12 }
0x19e9   :  { %v3274_v13 = vpop.f32.mrf.mxu1 }
0x19ea   :  { %v3294_v44 = vadd.f32 %v3859_v15, %v3284_v43  ;;  %v3283_v62 = vadd.f32 %v3274_v13, %v3079_v11  ;;  %v3863_v11 = vld [vmem:[%s5079_s1 + $0x1] ss:$0 sm:$0xff] }
0x19ec   :  { %v3293_v45 = vadd.f32 %v3859_v15, %v3283_v62  ;;  %v3296_v46 = vadd.f32 %v3294_v44, %v4962_v37 }
0x19ee   :  { %v3304_v47 = vsel %vm126_vm0, %v3296_v46, 0.0  ;;  %v3295_v48 = vadd.f32 %v3293_v45, %v4958_v35 }
0x19ef   :  { %3305 = vadd.xlane.f32.xlu1 %v3304_v47 }
0x19f0   :  { %v3301_v49 = vsel %vm126_vm0, %v3295_v48, 0.0 }
0x19f1   :  { %3302 = vadd.xlane.f32.xlu0 %v3301_v49 }
0x1a78   :  { %v3306_v51 = vpop.xlane.xlu1 %3305 }
0x1a79   :  { %v3308_v52 = vmul.f32 0.03125, %v3306_v51 }
0x1a7a   :  { %v3303_v53 = vpop.xlane.xlu0 %3302 }
0x1a7b   :  { %v3310_v54 = vsub.f32 %v3296_v46, %v3308_v52  ;;  %v3307_v55 = vmul.f32 0.03125, %v3303_v53 }
0x1a7d   :  { %v3309_v56 = vsub.f32 %v3295_v48, %v3307_v55  ;;  %v3312_v57 = vmul.f32 %v3310_v54, %v3310_v54 }
0x1a7f   :  { %v3316_v37 = vsel %vm126_vm0, %v3312_v57, 0.0  ;;  %v3311_v33 = vmul.f32 %v3309_v56, %v3309_v56 }
0x1a80   :  { %3317 = vadd.xlane.f32.xlu1 %v3316_v37 }
0x1a81   :  { %v3313_v35 = vsel %vm126_vm0, %v3311_v33, 0.0 }
0x1a82   :  { %3314 = vadd.xlane.f32.xlu0 %v3313_v35 }
0x1b09   :  { %v3318_v0 = vpop.xlane.xlu1 %3317 }
0x1b0a   :  { %v3320_v1 = vmul.f32 0.03125, %v3318_v0 }
0x1b0b   :  { %v3315_v2 = vpop.xlane.xlu0 %3314 }
0x1b0c   :  { %v3319_v3 = vmul.f32 0.03125, %v3315_v2  ;;  %v3322_v4 = vadd.f32 1e-12, %v3320_v1 }
0x1b0e   :  { %v3321_v5 = vadd.f32 1e-12, %v3319_v3 }
0x1b10   :  { %4426 = vrsqrt.f32 %v3321_v5 }
0x1b11   :  { %4428 = vrsqrt.f32 %v3322_v4 }
0x1b1d   :  { %v4427_v6 = vpop.eup %4426 }
0x1b1e   :  { %v3325_v7 = vmul.f32 %v4427_v6, %v3309_v56  ;;  %v4429_v8 = vpop.eup %4428 }
0x1b1f   :  { %v3326_v12 = vmul.f32 %v4429_v8, %v3310_v54 }
0x1b20   :  { %v3333_v10 = vmul.f32 %v3862_v9, %v3325_v7 }
0x1b21   :  { %v3334_v14 = vmul.f32 %v3862_v9, %v3326_v12 }
0x1b22   :  { %v3341_v63 = vadd.f32 %v3863_v11, %v3333_v10 }
0x1b23   :  { %v3342_v61 = vadd.f32 %v3863_v11, %v3334_v14 }
0x1b24   :  { %4281 = vmatmul.mubr.msk.f32.vlgmr.msra.gmra.mxu0 %vm126_vm0, %v3341_v63 }
0x1b25   :  { %4295 = vmatpush3.msra.mxu0 %v3346_v58  ;;  %4302 = vmatprep.mubr.msk.f32.mxu0 %vm4494_vm1, %v4493_v34 }
0x1b26   :  { %4296 = vmatprep.subr.mxu0 %v4493_v34 }
0x1b27   :  { %4297 = vmatpush3.msra.mxu0 %v3345_v31 }
0x1b28   :  { %4298 = vmatprep.subr.mxu0 %v4493_v34 }
0x1b29   :  { %4299 = vmatpush3.msra.mxu0 %v3344_v59 }
0x1b2a   :  { %4300 = vmatprep.subr.mxu0 %v4493_v34 }
0x1b2b   :  { %4301 = vmatpush3.msra.mxu0 %v3343_v60 }
0x1b2c   :  { %4303 = vmatmul.mubr.msk.f32.vlgmr.msra.gmra.mxu0 %vm126_vm0, %v3342_v61 }
0x1be4   :  { %v3417_v21 = vpop.f32.mrf.mxu0 }
0x1be5   :  { %v3418_v22 = vadd.f32 %v3417_v21, %v3347_v20 }
0x1be6   :  { %v4282_v23 = vpop.f32.mrf.mxu0 }
0x1be7   :  { %4430 = vtanh.f32 %v3418_v22 }
0x1bec   :  { %v3592_v25 = vpop.f32.mrf.mxu0 }
0x1bed   :  { %v3593_v26 = vadd.f32 %v3592_v25, %v3522_v24 }
0x1bee   :  { %v4304_v27 = vpop.f32.mrf.mxu0 }
0x1bef   :  { %4432 = vtanh.f32 %v3593_v26 }
0x1bf4   :  { %v4431_v28 = vpop.eup %4430 }
0x1bf5   :  { %4292 = vmatmul.mubr.msk.f32.vlgmr.msra.gmra.mxu1 %vm126_vm0, %v4431_v28  ;;  %v3502_v29 = vmul.f32 %v4431_v28, %v4431_v28 }
0x1bf6   :  { %4306 = vmatpush3.msra.mxu1 %v3425_v16  ;;  %4313 = vmatprep.mubr.msk.f32.mxu1 %vm4494_vm1, %v4493_v34 }
0x1bf7   :  { %4307 = vmatprep.subr.mxu1 %v4493_v34  ;;  %v3504_v30 = vsel %vm3503_vm6, %v3502_v29, 0.0 }
0x1bf8   :  { %4308 = vmatpush3.msra.mxu1 %v3424_v17  ;;  %3505 = vadd.xlane.f32.xlu0 %v3504_v30 }
0x1bf9   :  { %4309 = vmatprep.subr.mxu1 %v4493_v34 }
0x1bfa   :  { %4310 = vmatpush3.msra.mxu1 %v3423_v18 }
0x1bfb   :  { %4311 = vmatprep.subr.mxu1 %v4493_v34 }
0x1bfc   :  { %v4433_v32 = vpop.eup %4432  ;;  %4312 = vmatpush3.msra.mxu1 %v3422_v19 }
0x1bfd   :  { %4314 = vmatmul.mubr.msk.f32.vlgmr.msra.gmra.mxu1 %vm126_vm0, %v4433_v32  ;;  %v3676_v50 = vmul.f32 %v4433_v32, %v4433_v32 }
0x1bff   :  { %v3677_v36 = vsel %vm3503_vm6, %v3676_v50, 0.0 }
0x1c00   :  { %3678 = vadd.xlane.f32.xlu1 %v3677_v36 }
0x1c81   :  { %v3506_v38 = vpop.xlane.xlu0 %3505 }
0x1c82   :  { %4434 = vrsqrt.f32 %v3506_v38  ;;  %vm3509_vm7 = vcmp.eq.f32.partialorder %v3506_v38, inf  ;;  %v3512_v42 = vand.u32 2147483648, %v3506_v38  ;;  %vm3511_vm8 = vcmp.eq.f32.partialorder %v3506_v38, 0.0 }
0x1c89   :  { %v3679_v40 = vpop.xlane.xlu1 %3678 }
0x1c8a   :  { %4436 = vrsqrt.f32 %v3679_v40  ;;  %vm3682_vm9 = vcmp.eq.f32.partialorder %v3679_v40, inf  ;;  %v3685_v62 = vand.u32 2147483648, %v3679_v40  ;;  %vm3684_vm10 = vcmp.eq.f32.partialorder %v3679_v40, 0.0 }
0x1c8f   :  { %v4435_v39 = vpop.eup %4434 }
0x1c90   :  { %v3508_v41 = vmul.f32 %v4435_v39, %v3506_v38 }
0x1c92   :  { %v3510_v15 = vsel %vm3509_vm7, %v3506_v38, %v3508_v41 }
0x1c93   :  { %v3513_v43 = vsel %vm3511_vm8, %v3512_v42, %v3510_v15 }
0x1c94   :  { %v3514_v34 = vmax.f32 %v3513_v43, 1e-12 }
0x1c96   :  { %4438 = vrcp.f32 %v3514_v34 }
0x1c97   :  { %v4437_v13 = vpop.eup %4436 }
0x1c98   :  { %v3681_v44 = vmul.f32 %v4437_v13, %v3679_v40 }
0x1c9a   :  { %v3683_v45 = vsel %vm3682_vm9, %v3679_v40, %v3681_v44 }
0x1c9b   :  { %v3686_v46 = vsel %vm3684_vm10, %v3685_v62, %v3683_v45 }
0x1c9c   :  { %v3687_v47 = vmax.f32 %v3686_v46, 1e-12 }
0x1c9e   :  { %4440 = vrcp.f32 %v3687_v47 }
0x1ca3   :  { %v4439_v48 = vpop.eup %4438 }
0x1ca4   :  { %v3516_v49 = vmul.f32 %v4439_v48, %v4431_v28 }
0x1ca6   :  { %3517 = vst.msk [vmem:[#allocation3] sm:$0x1] %vm3503_vm6, %v3516_v49 }
0x1cab   :  { %v4441_v51 = vpop.eup %4440 }
0x1cac   :  { %v3689_v52 = vmul.f32 %v4441_v51, %v4433_v32 }
0x1cae   :  { %3690 = vst.msk [vmem:[#allocation3 + $0x1] sm:$0x1] %vm3503_vm6, %v3689_v52 }
0x1caf   :  { %4453 = shalt.err (!%p4450_p4)
}
0x1cb0   :  { %3702 = dma.vmem_to_hbm [thread:$0]  %s3700_s3, 32, %s4655_s4, [#allocation4]   ;;  %v3426_v53 = vld [vmem:[%s4645_s20] sm:$0x1]  ;;  %vm3500_vm11 = vcmask 57344  }
0x1cb1   :  { %v3601_v57 = vld [vmem:[%s4645_s20] sm:$0x1] }
0x1cb5   :  { %v3496_v54 = vpop.f32.mrf.mxu1 }
0x1cb6   :  { %v3497_v55 = vadd.f32 %v3496_v54, %v3426_v53 }
0x1cb7   :  { %v4293_v56 = vpop.f32.mrf.mxu1 }
0x1cb8   :  { %3501 = vst.msk [vmem:[%s4650_s27] sm:$0x1] %vm3500_vm11, %v3497_v55 }
0x1cbd   :  { %v3671_v37 = vpop.f32.mrf.mxu1 }
0x1cbe   :  { %v3672_v33 = vadd.f32 %v3671_v37, %v3601_v57 }
0x1cbf   :  { %v4315_v35 = vpop.f32.mrf.mxu1 }
0x1cc0   :  { %3675 = vst.msk [vmem:[%s4650_s27 + $0x1] sm:$0x1] %vm3500_vm11, %v3672_v33 }
0x1cc1   :  { %4462 = dma.done.wait [#allocation4], 32  }
0x1cc2   :  { %4463 = vsyncadd [#allocation4], 4294967264 }
0x1cc3   :  { %3708 = vsyncpa [#allocation4], 1 }

</bundles_post_ra>
